<compile_context>
chip_gen: v7x
topology: tpu7x:2x2x1
jax: 0.10.0
libtpu: 0.0.40
codegen_flags: <defaults>
</compile_context>

<pallas_src>
import functools

import jax
import jax.numpy as jnp
from jax.experimental import pallas as pl
from jax.experimental.pallas import tpu as pltpu

LN_EPS = 1e-5  # PyTorch nn.LayerNorm default


def _layer_norm(x, gamma, beta):
    """LayerNorm over the last axis (biased variance, like PyTorch), in f32."""
    mean = jnp.mean(x, axis=-1, keepdims=True)
    centered = x - mean
    var = jnp.mean(centered * centered, axis=-1, keepdims=True)
    inv = jax.lax.rsqrt(var + LN_EPS)
    return centered * inv * gamma + beta


def voice_emotion_kernel(
    x_ref,             # (B_TILE*S, H)  incoming dtype (f32) -- flattened batch tile
    gmask_ref,         # (B_TILE, B_TILE*S) f32 constant group mask (hoisted)
    wa1_ref, ba1_ref,  # attention Linear(H -> 128): bf16 (H,128), f32 (1,128)
    wa2_ref, ba2_ref,  # attention Linear(128 -> 1) as a row: f32 (1,128), f32 (1,1)
    w1_ref, b1_ref,    # fc1 (H -> 512): bf16, f32
    g1_ref, be1_ref,   # layer_norm1 (512)
    w2_ref, b2_ref,    # fc2 (512 -> 256): bf16, f32
    g2_ref, be2_ref,   # layer_norm2 (256)
    w3_ref, b3_ref,    # fc3 (256 -> C_pad): bf16, f32 (padded lane-dense width)
    logits_ref,        # (B_TILE, C_pad) f32
    feat_ref,          # (B_TILE, 256)   f32
    *, seq_len, b_tile,
):
    S = seq_len
    Bt = b_tile

    # Cast to bf16 in-kernel (one VPU pass over VMEM data), avoiding a
    # wrapper-side HBM round trip of the large activation tensor.
    x_bf = x_ref[...].astype(jnp.bfloat16)            # (R, H)

    # ---- attention scores --------------------------------------------------
    # Linear(H->128) on the MXU (bf16 in, f32 accumulate), tanh on EUP/VPU.
    a = jnp.dot(x_bf, wa1_ref[...], preferred_element_type=jnp.float32) + ba1_ref[...]
    a = jnp.tanh(a)                                   # (R, 128) f32
    # 128 -> 1 projection as a VPU multiply + lane reduction (no N=1 matmul).
    scores = jnp.sum(a * wa2_ref[...], axis=-1, keepdims=True) + ba2_ref[...]  # (R, 1)

    # ---- softmax over the sequence axis ------------------------------------
    sc = scores.reshape(Bt, S)                        # small f32 relayout
    m = jnp.max(sc, axis=-1, keepdims=True)
    e = jnp.exp(sc - m)
    denom = jnp.sum(e, axis=-1, keepdims=True)
    attn = e * pl.reciprocal(denom, approx=True)      # (Bt, S) f32

    # ---- attention pooling as one 2-D matmul -------------------------------
    # P[b, b*S + s] = attn[b, s], zero elsewhere, so context = P @ x.
    # Build P with a cheap lane-concat + precomputed mask (no (S,R) scatter
    # matrix, no extra f32 MXU matmul, no per-step iota/divide work).
    tiled = jnp.concatenate([attn] * Bt, axis=1)      # (Bt, Bt*S): attn[b, j % S]
    p_attn = tiled * gmask_ref[...]                   # zero cross-batch columns
    context = jnp.dot(p_attn.astype(jnp.bfloat16), x_bf,
                      preferred_element_type=jnp.float32)             # (Bt, H) f32

    # ---- MLP head (bf16 matmuls, f32 LayerNorm) -----------------------------
    h1 = jnp.dot(context.astype(jnp.bfloat16), w1_ref[...],
                 preferred_element_type=jnp.float32) + b1_ref[...]
    h1 = jnp.maximum(h1, 0.0)
    h1 = _layer_norm(h1, g1_ref[...], be1_ref[...])

    h2 = jnp.dot(h1.astype(jnp.bfloat16), w2_ref[...],
                 preferred_element_type=jnp.float32) + b2_ref[...]
    h2 = jnp.maximum(h2, 0.0)
    h2 = _layer_norm(h2, g2_ref[...], be2_ref[...])

    logits = jnp.dot(h2.astype(jnp.bfloat16), w3_ref[...],
                     preferred_element_type=jnp.float32) + b3_ref[...]

    feat_ref[...] = h2.astype(feat_ref.dtype)
    logits_ref[...] = logits.astype(logits_ref.dtype)


def _pick_vmem_limit_bytes():
    """~half of per-core VMEM: 32 MiB on v7x, 64 MiB on v5e/v6e; safe fallback."""
    default = 32 * 1024 * 1024
    try:
        cap = int(pltpu.get_tpu_info().vmem_capacity_bytes)
    except Exception:
        return default
    if cap <= 0:
        return default
    return int(min(96 * 1024 * 1024, max(default, cap // 2)))


@functools.partial(jax.jit, static_argnames=("return_features", "b_tile"))
def voice_emotion_forward(x, params, return_features=False, b_tile=None):
    B, S, H = x.shape
    num_classes = params["w3"].shape[1]
    c_pad = ((num_classes + 127) // 128) * 128        # lane-dense logits width

    vmem_limit = _pick_vmem_limit_bytes()

    # Adaptive batch tile (opt: avoid padded zero-row DMA/compute for small B).
    # For B > 8 the tile must be a multiple of 8 (second-minor block constraint);
    # it may grow on big-VMEM generations to amortize per-grid-step overhead.
    if b_tile is None:
        if B <= 8:
            b_tile = B
        else:
            per_row_bytes = S * (10 * H + 1024)   # f32 x (x2 buffers) + bf16 copy + (.,128)
            b_tile = 8
            if B >= 16 and 16 * per_row_bytes <= vmem_limit // 2:
                b_tile = 16

    # Pad batch to a multiple of the batch tile (padded rows are discarded).
    b_pad = ((B + b_tile - 1) // b_tile) * b_tile
    if b_pad != B:
        x = jnp.pad(x, ((0, b_pad - B), (0, 0), (0, 0)))

    # Flatten so every matmul in the kernel is plain 2-D (free metadata reshape,
    # NO dtype cast here -- x streams HBM->VMEM once in its incoming dtype).
    x2d = x.reshape(b_pad * S, H)

    # Constant group mask for attention pooling (hoisted out of the kernel).
    r = b_tile * S
    row_b = jnp.arange(b_tile, dtype=jnp.int32)[:, None]      # (Bt, 1)
    col_b = jnp.arange(r, dtype=jnp.int32)[None, :] // S      # (1, R)
    gmask = (col_b == row_b).astype(jnp.float32)               # (Bt, R)

    # Weights: bf16 storage for matmul operands (tiny, read once per grid step).
    wa1 = params["wa1"].astype(jnp.bfloat16)
    wa2_row = params["wa2"].reshape(1, -1).astype(jnp.float32)  # (1, 128)
    w1 = params["w1"].astype(jnp.bfloat16)
    w2 = params["w2"].astype(jnp.bfloat16)
    w3 = params["w3"]
    b3 = params["b3"]
    if c_pad != num_classes:
        w3 = jnp.pad(w3, ((0, 0), (0, c_pad - num_classes)))
        b3 = jnp.pad(b3, ((0, 0), (0, c_pad - num_classes)))
    w3 = w3.astype(jnp.bfloat16)

    weights = [
        wa1, params["ba1"], wa2_row, params["ba2"],
        w1, params["b1"], params["g1"], params["be1"],
        w2, params["b2"], params["g2"], params["be2"],
        w3, b3,
    ]

    grid = (b_pad // b_tile,)

    in_specs = [pl.BlockSpec((r, H), lambda i: (i, 0)),
                pl.BlockSpec(gmask.shape, lambda i: (0, 0))]
    in_specs += [pl.BlockSpec(w.shape, lambda i: (0, 0)) for w in weights]
    out_specs = (
        pl.BlockSpec((b_tile, c_pad), lambda i: (i, 0)),
        pl.BlockSpec((b_tile, 256), lambda i: (i, 0)),
    )
    out_shape = (
        jax.ShapeDtypeStruct((b_pad, c_pad), jnp.float32),
        jax.ShapeDtypeStruct((b_pad, 256), jnp.float32),
    )

    flops = int(2 * b_pad * S * H * 128                 # attention Linear
                + 2 * b_pad * S * 128                   # score mul + lane reduce
                + 2 * b_pad * b_tile * S * H            # pooling P @ x
                + 2 * b_pad * (H * 512 + 512 * 256 + 256 * c_pad))
    transcendentals = int(b_pad * S * (128 + 1))        # tanh + exp
    bytes_accessed = int(
        x2d.size * x2d.dtype.itemsize
        + gmask.size * 4
        + sum(int(w.size) * jnp.dtype(w.dtype).itemsize for w in weights)
        + b_pad * (c_pad + 256) * 4)

    kernel = functools.partial(voice_emotion_kernel, seq_len=S, b_tile=b_tile)

    logits_p, feats_p = pl.pallas_call(
        kernel,
        grid=grid,
        in_specs=in_specs,
        out_specs=out_specs,
        out_shape=out_shape,
        compiler_params=pltpu.CompilerParams(
            dimension_semantics=("parallel",),
            vmem_limit_bytes=vmem_limit),
        cost_estimate=pl.CostEstimate(flops=flops,
                                      transcendentals=transcendentals,
                                      bytes_accessed=bytes_accessed),
    )(x2d, gmask, *weights)

    logits = logits_p[:B, :num_classes]
    features = feats_p[:B]
    if return_features:
        return logits, features
    return logits


def init_params(key, hidden=768, num_classes=4):
    """Deterministic synthetic parameters (shapes match the PyTorch module)."""
    ks = jax.random.split(key, 8)
    scale = 0.02

    def lin(k, fan_in, fan_out):
        return (scale * jax.random.normal(k, (fan_in, fan_out), jnp.float32),
                jnp.zeros((1, fan_out), jnp.float32))

    wa1, ba1 = lin(ks[0], hidden, 128)
    wa2, ba2 = lin(ks[1], 128, 1)
    w1, b1 = lin(ks[2], hidden, 512)
    w2, b2 = lin(ks[3], 512, 256)
    w3, b3 = lin(ks[4], 256, num_classes)

    return {
        "wa1": wa1, "ba1": ba1, "wa2": wa2, "ba2": ba2,
        "w1": w1, "b1": b1,
        "g1": jnp.ones((1, 512), jnp.float32), "be1": jnp.zeros((1, 512), jnp.float32),
        "w2": w2, "b2": b2,
        "g2": jnp.ones((1, 256), jnp.float32), "be2": jnp.zeros((1, 256), jnp.float32),
        "w3": w3, "b3": b3,
    }


def reference_forward(x, p):
    """Pure-JAX f32 reference mirroring the PyTorch forward (dropout = identity)."""
    scores = jnp.tanh(x @ p["wa1"] + p["ba1"]) @ p["wa2"] + p["ba2"]  # (B,S,1)
    attn = jax.nn.softmax(scores[..., 0], axis=1)                     # (B,S)
    ctx = jnp.einsum("bs,bsh->bh", attn, x)

    def ln(v, g, b):
        mu = v.mean(-1, keepdims=True)
        var = ((v - mu) ** 2).mean(-1, keepdims=True)
        return (v - mu) / jnp.sqrt(var + LN_EPS) * g + b

    h1 = ln(jax.nn.relu(ctx @ p["w1"] + p["b1"]), p["g1"], p["be1"])
    h2 = ln(jax.nn.relu(h1 @ p["w2"] + p["b2"]), p["g2"], p["be2"])
    return h2 @ p["w3"] + p["b3"]


if __name__ == "__main__":
    B, S, H, C = 2, 8, 768, 4
    key = jax.random.PRNGKey(0)
    kx, kp = jax.random.split(key)

    x = jax.random.normal(kx, (B, S, H), jnp.float32)
    params = init_params(kp, hidden=H, num_classes=C)

    logits, feats = voice_emotion_forward(x, params, return_features=True)
    logits = jax.block_until_ready(logits)
    feats = jax.block_until_ready(feats)

    ref = reference_forward(x, params)
    assert logits.shape == (B, C)
    assert feats.shape == (B, 256)
    assert bool(jnp.all(jnp.isfinite(logits)))
    max_err = float(jnp.max(jnp.abs(logits - ref)))
    # bf16 matmul operands with f32 accumulation => loosened tolerance vs f32 ref.
    assert jnp.allclose(logits, ref, atol=5e-2, rtol=5e-2), (
        f"mismatch: max abs err {max_err}"
    )

    print("KERNEL_OK")
</pallas_src>

<mosaic_0001>
module attributes {stable_mosaic.version = 11 : i64} {
  func.func @voice_emotion_kernel(%arg0: i32, %arg1: memref<16x768xf32, #tpu.memory_space<vmem>>, %arg2: memref<2x16xf32, #tpu.memory_space<vmem>>, %arg3: memref<768x128xbf16, #tpu.memory_space<vmem>>, %arg4: memref<1x128xf32, #tpu.memory_space<vmem>>, %arg5: memref<1x128xf32, #tpu.memory_space<vmem>>, %arg6: memref<1x1xf32, #tpu.memory_space<vmem>>, %arg7: memref<768x512xbf16, #tpu.memory_space<vmem>>, %arg8: memref<1x512xf32, #tpu.memory_space<vmem>>, %arg9: memref<1x512xf32, #tpu.memory_space<vmem>>, %arg10: memref<1x512xf32, #tpu.memory_space<vmem>>, %arg11: memref<512x256xbf16, #tpu.memory_space<vmem>>, %arg12: memref<1x256xf32, #tpu.memory_space<vmem>>, %arg13: memref<1x256xf32, #tpu.memory_space<vmem>>, %arg14: memref<1x256xf32, #tpu.memory_space<vmem>>, %arg15: memref<256x128xbf16, #tpu.memory_space<vmem>>, %arg16: memref<1x128xf32, #tpu.memory_space<vmem>>, %arg17: memref<2x128xf32, #tpu.memory_space<vmem>>, %arg18: memref<2x256xf32, #tpu.memory_space<vmem>>) attributes {dimension_semantics = [#tpu.dimension_semantics<parallel>], iteration_bounds = array<i64: 1>, scalar_prefetch = 0 : i64, scratch_operands = 0 : i64, tpu.core_type = #tpu.core_type<tc>, window_params = [{transform_indices = @transform_0, window_bounds = array<i64: 16, 768>}, {pipeline_mode = #tpu.pipeline_mode<synchronous>, transform_indices = @transform_1, window_bounds = array<i64: 2, 16>}, {pipeline_mode = #tpu.pipeline_mode<synchronous>, transform_indices = @transform_2, window_bounds = array<i64: 768, 128>}, {pipeline_mode = #tpu.pipeline_mode<synchronous>, transform_indices = @transform_3, window_bounds = array<i64: 1, 128>}, {pipeline_mode = #tpu.pipeline_mode<synchronous>, transform_indices = @transform_4, window_bounds = array<i64: 1, 128>}, {pipeline_mode = #tpu.pipeline_mode<synchronous>, transform_indices = @transform_5, window_bounds = array<i64: 1, 1>}, {pipeline_mode = #tpu.pipeline_mode<synchronous>, transform_indices = @transform_6, window_bounds = array<i64: 768, 512>}, {pipeline_mode = #tpu.pipeline_mode<synchronous>, transform_indices = @transform_7, window_bounds = array<i64: 1, 512>}, {pipeline_mode = #tpu.pipeline_mode<synchronous>, transform_indices = @transform_8, window_bounds = array<i64: 1, 512>}, {pipeline_mode = #tpu.pipeline_mode<synchronous>, transform_indices = @transform_9, window_bounds = array<i64: 1, 512>}, {pipeline_mode = #tpu.pipeline_mode<synchronous>, transform_indices = @transform_10, window_bounds = array<i64: 512, 256>}, {pipeline_mode = #tpu.pipeline_mode<synchronous>, transform_indices = @transform_11, window_bounds = array<i64: 1, 256>}, {pipeline_mode = #tpu.pipeline_mode<synchronous>, transform_indices = @transform_12, window_bounds = array<i64: 1, 256>}, {pipeline_mode = #tpu.pipeline_mode<synchronous>, transform_indices = @transform_13, window_bounds = array<i64: 1, 256>}, {pipeline_mode = #tpu.pipeline_mode<synchronous>, transform_indices = @transform_14, window_bounds = array<i64: 256, 128>}, {pipeline_mode = #tpu.pipeline_mode<synchronous>, transform_indices = @transform_15, window_bounds = array<i64: 1, 128>}, {transform_indices = @transform_16, window_bounds = array<i64: 2, 128>}, {transform_indices = @transform_17, window_bounds = array<i64: 2, 256>}]} {
    %c0 = arith.constant 0 : index
    %c0_0 = arith.constant 0 : index
    %0 = vector.load %arg1[%c0, %c0_0] : memref<16x768xf32, #tpu.memory_space<vmem>>, vector<16x768xf32>
    %1 = arith.truncf %0 : vector<16x768xf32> to vector<16x768xbf16>
    %c0_1 = arith.constant 0 : index
    %c0_2 = arith.constant 0 : index
    %2 = vector.load %arg3[%c0_1, %c0_2] : memref<768x128xbf16, #tpu.memory_space<vmem>>, vector<768x128xbf16>
    %cst = arith.constant dense<0.000000e+00> : vector<16x128xf32>
    %3 = tpu.matmul %1, %2, %cst {dimension_numbers = #tpu.dot_dimension_numbers<[1], [0], [0], [1], [0, 0, 1, 1], [], []>} : vector<16x768xbf16>, vector<768x128xbf16>, vector<16x128xf32> -> vector<16x128xf32>
    %c0_3 = arith.constant 0 : index
    %c0_4 = arith.constant 0 : index
    %4 = vector.load %arg4[%c0_3, %c0_4] : memref<1x128xf32, #tpu.memory_space<vmem>>, vector<1x128xf32>
    %5 = vector.broadcast %4 : vector<1x128xf32> to vector<16x128xf32>
    %6 = arith.addf %3, %5 : vector<16x128xf32>
    %7 = math.tanh %6 : vector<16x128xf32>
    %c0_5 = arith.constant 0 : index
    %c0_6 = arith.constant 0 : index
    %8 = vector.load %arg5[%c0_5, %c0_6] : memref<1x128xf32, #tpu.memory_space<vmem>>, vector<1x128xf32>
    %9 = vector.broadcast %8 : vector<1x128xf32> to vector<16x128xf32>
    %10 = arith.mulf %7, %9 : vector<16x128xf32>
    %cst_7 = arith.constant dense<0.000000e+00> : vector<16xf32>
    %11 = vector.multi_reduction <add>, %10, %cst_7 [1] : vector<16x128xf32> to vector<16xf32>
    %12 = vector.shape_cast %11 : vector<16xf32> to vector<16x1xf32>
    %c0_8 = arith.constant 0 : index
    %c0_9 = arith.constant 0 : index
    %13 = vector.load %arg6[%c0_8, %c0_9] : memref<1x1xf32, #tpu.memory_space<vmem>>, vector<1x1xf32>
    %14 = vector.broadcast %13 : vector<1x1xf32> to vector<16x1xf32>
    %15 = arith.addf %12, %14 : vector<16x1xf32>
    %16 = vector.shape_cast %15 : vector<16x1xf32> to vector<2x8xf32>
    %cst_10 = arith.constant dense<0xFF800000> : vector<2xf32>
    %17 = vector.multi_reduction <maximumf>, %16, %cst_10 [1] : vector<2x8xf32> to vector<2xf32>
    %18 = vector.shape_cast %17 : vector<2xf32> to vector<2x1xf32>
    %19 = vector.broadcast %18 : vector<2x1xf32> to vector<2x8xf32>
    %20 = arith.subf %16, %19 : vector<2x8xf32>
    %21 = math.exp %20 : vector<2x8xf32>
    %cst_11 = arith.constant dense<0.000000e+00> : vector<2xf32>
    %22 = vector.multi_reduction <add>, %21, %cst_11 [1] : vector<2x8xf32> to vector<2xf32>
    %23 = vector.shape_cast %22 : vector<2xf32> to vector<2x1xf32>
    %24 = tpu.reciprocal %23 {approx = true} : vector<2x1xf32> -> vector<2x1xf32>
    %25 = vector.broadcast %24 : vector<2x1xf32> to vector<2x8xf32>
    %26 = arith.mulf %21, %25 : vector<2x8xf32>
    %27 = tpu.concatenate %26, %26 in 1 : vector<2x8xf32>, vector<2x8xf32> -> vector<2x16xf32>
    %c0_12 = arith.constant 0 : index
    %c0_13 = arith.constant 0 : index
    %28 = vector.load %arg2[%c0_12, %c0_13] : memref<2x16xf32, #tpu.memory_space<vmem>>, vector<2x16xf32>
    %29 = arith.mulf %27, %28 : vector<2x16xf32>
    %30 = arith.truncf %29 : vector<2x16xf32> to vector<2x16xbf16>
    %cst_14 = arith.constant dense<0.000000e+00> : vector<2x768xf32>
    %31 = tpu.matmul %30, %1, %cst_14 {dimension_numbers = #tpu.dot_dimension_numbers<[1], [0], [0], [1], [0, 0, 1, 1], [], []>} : vector<2x16xbf16>, vector<16x768xbf16>, vector<2x768xf32> -> vector<2x768xf32>
    %32 = arith.truncf %31 : vector<2x768xf32> to vector<2x768xbf16>
    %c0_15 = arith.constant 0 : index
    %c0_16 = arith.constant 0 : index
    %33 = vector.load %arg7[%c0_15, %c0_16] : memref<768x512xbf16, #tpu.memory_space<vmem>>, vector<768x512xbf16>
    %cst_17 = arith.constant dense<0.000000e+00> : vector<2x512xf32>
    %34 = tpu.matmul %32, %33, %cst_17 {dimension_numbers = #tpu.dot_dimension_numbers<[1], [0], [0], [1], [0, 0, 1, 1], [], []>} : vector<2x768xbf16>, vector<768x512xbf16>, vector<2x512xf32> -> vector<2x512xf32>
    %c0_18 = arith.constant 0 : index
    %c0_19 = arith.constant 0 : index
    %35 = vector.load %arg8[%c0_18, %c0_19] : memref<1x512xf32, #tpu.memory_space<vmem>>, vector<1x512xf32>
    %36 = vector.broadcast %35 : vector<1x512xf32> to vector<2x512xf32>
    %37 = arith.addf %34, %36 : vector<2x512xf32>
    %cst_20 = arith.constant 0.000000e+00 : f32
    %38 = vector.broadcast %cst_20 : f32 to vector<2x512xf32>
    %39 = arith.maximumf %37, %38 : vector<2x512xf32>
    %c0_21 = arith.constant 0 : index
    %c0_22 = arith.constant 0 : index
    %40 = vector.load %arg9[%c0_21, %c0_22] : memref<1x512xf32, #tpu.memory_space<vmem>>, vector<1x512xf32>
    %c0_23 = arith.constant 0 : index
    %c0_24 = arith.constant 0 : index
    %41 = vector.load %arg10[%c0_23, %c0_24] : memref<1x512xf32, #tpu.memory_space<vmem>>, vector<1x512xf32>
    %cst_25 = arith.constant dense<0.000000e+00> : vector<2xf32>
    %42 = vector.multi_reduction <add>, %39, %cst_25 [1] : vector<2x512xf32> to vector<2xf32>
    %43 = vector.shape_cast %42 : vector<2xf32> to vector<2x1xf32>
    %cst_26 = arith.constant 5.120000e+02 : f32
    %44 = vector.broadcast %cst_26 : f32 to vector<2x1xf32>
    %45 = arith.divf %43, %44 : vector<2x1xf32>
    %46 = vector.broadcast %45 : vector<2x1xf32> to vector<2x512xf32>
    %47 = arith.subf %39, %46 : vector<2x512xf32>
    %48 = arith.mulf %47, %47 : vector<2x512xf32>
    %cst_27 = arith.constant dense<0.000000e+00> : vector<2xf32>
    %49 = vector.multi_reduction <add>, %48, %cst_27 [1] : vector<2x512xf32> to vector<2xf32>
    %50 = vector.shape_cast %49 : vector<2xf32> to vector<2x1xf32>
    %cst_28 = arith.constant 5.120000e+02 : f32
    %51 = vector.broadcast %cst_28 : f32 to vector<2x1xf32>
    %52 = arith.divf %50, %51 : vector<2x1xf32>
    %cst_29 = arith.constant 9.99999974E-6 : f32
    %53 = vector.broadcast %cst_29 : f32 to vector<2x1xf32>
    %54 = arith.addf %52, %53 : vector<2x1xf32>
    %55 = math.rsqrt %54 : vector<2x1xf32>
    %56 = vector.broadcast %55 : vector<2x1xf32> to vector<2x512xf32>
    %57 = arith.mulf %47, %56 : vector<2x512xf32>
    %58 = vector.broadcast %40 : vector<1x512xf32> to vector<2x512xf32>
    %59 = arith.mulf %57, %58 : vector<2x512xf32>
    %60 = vector.broadcast %41 : vector<1x512xf32> to vector<2x512xf32>
    %61 = arith.addf %59, %60 : vector<2x512xf32>
    %62 = arith.truncf %61 : vector<2x512xf32> to vector<2x512xbf16>
    %c0_30 = arith.constant 0 : index
    %c0_31 = arith.constant 0 : index
    %63 = vector.load %arg11[%c0_30, %c0_31] : memref<512x256xbf16, #tpu.memory_space<vmem>>, vector<512x256xbf16>
    %cst_32 = arith.constant dense<0.000000e+00> : vector<2x256xf32>
    %64 = tpu.matmul %62, %63, %cst_32 {dimension_numbers = #tpu.dot_dimension_numbers<[1], [0], [0], [1], [0, 0, 1, 1], [], []>} : vector<2x512xbf16>, vector<512x256xbf16>, vector<2x256xf32> -> vector<2x256xf32>
    %c0_33 = arith.constant 0 : index
    %c0_34 = arith.constant 0 : index
    %65 = vector.load %arg12[%c0_33, %c0_34] : memref<1x256xf32, #tpu.memory_space<vmem>>, vector<1x256xf32>
    %66 = vector.broadcast %65 : vector<1x256xf32> to vector<2x256xf32>
    %67 = arith.addf %64, %66 : vector<2x256xf32>
    %cst_35 = arith.constant 0.000000e+00 : f32
    %68 = vector.broadcast %cst_35 : f32 to vector<2x256xf32>
    %69 = arith.maximumf %67, %68 : vector<2x256xf32>
    %c0_36 = arith.constant 0 : index
    %c0_37 = arith.constant 0 : index
    %70 = vector.load %arg13[%c0_36, %c0_37] : memref<1x256xf32, #tpu.memory_space<vmem>>, vector<1x256xf32>
    %c0_38 = arith.constant 0 : index
    %c0_39 = arith.constant 0 : index
    %71 = vector.load %arg14[%c0_38, %c0_39] : memref<1x256xf32, #tpu.memory_space<vmem>>, vector<1x256xf32>
    %cst_40 = arith.constant dense<0.000000e+00> : vector<2xf32>
    %72 = vector.multi_reduction <add>, %69, %cst_40 [1] : vector<2x256xf32> to vector<2xf32>
    %73 = vector.shape_cast %72 : vector<2xf32> to vector<2x1xf32>
    %cst_41 = arith.constant 2.560000e+02 : f32
    %74 = vector.broadcast %cst_41 : f32 to vector<2x1xf32>
    %75 = arith.divf %73, %74 : vector<2x1xf32>
    %76 = vector.broadcast %75 : vector<2x1xf32> to vector<2x256xf32>
    %77 = arith.subf %69, %76 : vector<2x256xf32>
    %78 = arith.mulf %77, %77 : vector<2x256xf32>
    %cst_42 = arith.constant dense<0.000000e+00> : vector<2xf32>
    %79 = vector.multi_reduction <add>, %78, %cst_42 [1] : vector<2x256xf32> to vector<2xf32>
    %80 = vector.shape_cast %79 : vector<2xf32> to vector<2x1xf32>
    %cst_43 = arith.constant 2.560000e+02 : f32
    %81 = vector.broadcast %cst_43 : f32 to vector<2x1xf32>
    %82 = arith.divf %80, %81 : vector<2x1xf32>
    %cst_44 = arith.constant 9.99999974E-6 : f32
    %83 = vector.broadcast %cst_44 : f32 to vector<2x1xf32>
    %84 = arith.addf %82, %83 : vector<2x1xf32>
    %85 = math.rsqrt %84 : vector<2x1xf32>
    %86 = vector.broadcast %85 : vector<2x1xf32> to vector<2x256xf32>
    %87 = arith.mulf %77, %86 : vector<2x256xf32>
    %88 = vector.broadcast %70 : vector<1x256xf32> to vector<2x256xf32>
    %89 = arith.mulf %87, %88 : vector<2x256xf32>
    %90 = vector.broadcast %71 : vector<1x256xf32> to vector<2x256xf32>
    %91 = arith.addf %89, %90 : vector<2x256xf32>
    %92 = arith.truncf %91 : vector<2x256xf32> to vector<2x256xbf16>
    %c0_45 = arith.constant 0 : index
    %c0_46 = arith.constant 0 : index
    %93 = vector.load %arg15[%c0_45, %c0_46] : memref<256x128xbf16, #tpu.memory_space<vmem>>, vector<256x128xbf16>
    %cst_47 = arith.constant dense<0.000000e+00> : vector<2x128xf32>
    %94 = tpu.matmul %92, %93, %cst_47 {dimension_numbers = #tpu.dot_dimension_numbers<[1], [0], [0], [1], [0, 0, 1, 1], [], []>} : vector<2x256xbf16>, vector<256x128xbf16>, vector<2x128xf32> -> vector<2x128xf32>
    %c0_48 = arith.constant 0 : index
    %c0_49 = arith.constant 0 : index
    %95 = vector.load %arg16[%c0_48, %c0_49] : memref<1x128xf32, #tpu.memory_space<vmem>>, vector<1x128xf32>
    %96 = vector.broadcast %95 : vector<1x128xf32> to vector<2x128xf32>
    %97 = arith.addf %94, %96 : vector<2x128xf32>
    %c0_50 = arith.constant 0 : index
    %c0_51 = arith.constant 0 : index
    %98 = vector.load %arg18[%c0_50, %c0_51] : memref<2x256xf32, #tpu.memory_space<vmem>>, vector<2x256xf32>
    tpu.vector_store %arg18[%c0_50, %c0_51], %91 {strides = array<i32>} : memref<2x256xf32, #tpu.memory_space<vmem>>, vector<2x256xf32>,
    %c0_52 = arith.constant 0 : index
    %c0_53 = arith.constant 0 : index
    %99 = vector.load %arg17[%c0_52, %c0_53] : memref<2x128xf32, #tpu.memory_space<vmem>>, vector<2x128xf32>
    tpu.vector_store %arg17[%c0_52, %c0_53], %97 {strides = array<i32>} : memref<2x128xf32, #tpu.memory_space<vmem>>, vector<2x128xf32>,
    return
  }
  func.func @transform_0(%arg0: i32) -> (i32, i32) {
    %c0_i32 = arith.constant 0 : i32
    %c0_i32_0 = arith.constant 0 : i32
    return %arg0, %c0_i32 : i32, i32
  }
  func.func @transform_1(%arg0: i32) -> (i32, i32) {
    %c0_i32 = arith.constant 0 : i32
    %c0_i32_0 = arith.constant 0 : i32
    %c0_i32_1 = arith.constant 0 : i32
    return %c0_i32, %c0_i32_0 : i32, i32
  }
  func.func @transform_2(%arg0: i32) -> (i32, i32) {
    %c0_i32 = arith.constant 0 : i32
    %c0_i32_0 = arith.constant 0 : i32
    %c0_i32_1 = arith.constant 0 : i32
    return %c0_i32, %c0_i32_0 : i32, i32
  }
  func.func @transform_3(%arg0: i32) -> (i32, i32) {
    %c0_i32 = arith.constant 0 : i32
    %c0_i32_0 = arith.constant 0 : i32
    %c0_i32_1 = arith.constant 0 : i32
    return %c0_i32, %c0_i32_0 : i32, i32
  }
  func.func @transform_4(%arg0: i32) -> (i32, i32) {
    %c0_i32 = arith.constant 0 : i32
    %c0_i32_0 = arith.constant 0 : i32
    %c0_i32_1 = arith.constant 0 : i32
    return %c0_i32, %c0_i32_0 : i32, i32
  }
  func.func @transform_5(%arg0: i32) -> (i32, i32) {
    %c0_i32 = arith.constant 0 : i32
    %c0_i32_0 = arith.constant 0 : i32
    %c0_i32_1 = arith.constant 0 : i32
    return %c0_i32, %c0_i32_0 : i32, i32
  }
  func.func @transform_6(%arg0: i32) -> (i32, i32) {
    %c0_i32 = arith.constant 0 : i32
    %c0_i32_0 = arith.constant 0 : i32
    %c0_i32_1 = arith.constant 0 : i32
    return %c0_i32, %c0_i32_0 : i32, i32
  }
  func.func @transform_7(%arg0: i32) -> (i32, i32) {
    %c0_i32 = arith.constant 0 : i32
    %c0_i32_0 = arith.constant 0 : i32
    %c0_i32_1 = arith.constant 0 : i32
    return %c0_i32, %c0_i32_0 : i32, i32
  }
  func.func @transform_8(%arg0: i32) -> (i32, i32) {
    %c0_i32 = arith.constant 0 : i32
    %c0_i32_0 = arith.constant 0 : i32
    %c0_i32_1 = arith.constant 0 : i32
    return %c0_i32, %c0_i32_0 : i32, i32
  }
  func.func @transform_9(%arg0: i32) -> (i32, i32) {
    %c0_i32 = arith.constant 0 : i32
    %c0_i32_0 = arith.constant 0 : i32
    %c0_i32_1 = arith.constant 0 : i32
    return %c0_i32, %c0_i32_0 : i32, i32
  }
  func.func @transform_10(%arg0: i32) -> (i32, i32) {
    %c0_i32 = arith.constant 0 : i32
    %c0_i32_0 = arith.constant 0 : i32
    %c0_i32_1 = arith.constant 0 : i32
    return %c0_i32, %c0_i32_0 : i32, i32
  }
  func.func @transform_11(%arg0: i32) -> (i32, i32) {
    %c0_i32 = arith.constant 0 : i32
    %c0_i32_0 = arith.constant 0 : i32
    %c0_i32_1 = arith.constant 0 : i32
    return %c0_i32, %c0_i32_0 : i32, i32
  }
  func.func @transform_12(%arg0: i32) -> (i32, i32) {
    %c0_i32 = arith.constant 0 : i32
    %c0_i32_0 = arith.constant 0 : i32
    %c0_i32_1 = arith.constant 0 : i32
    return %c0_i32, %c0_i32_0 : i32, i32
  }
  func.func @transform_13(%arg0: i32) -> (i32, i32) {
    %c0_i32 = arith.constant 0 : i32
    %c0_i32_0 = arith.constant 0 : i32
    %c0_i32_1 = arith.constant 0 : i32
    return %c0_i32, %c0_i32_0 : i32, i32
  }
  func.func @transform_14(%arg0: i32) -> (i32, i32) {
    %c0_i32 = arith.constant 0 : i32
    %c0_i32_0 = arith.constant 0 : i32
    %c0_i32_1 = arith.constant 0 : i32
    return %c0_i32, %c0_i32_0 : i32, i32
  }
  func.func @transform_15(%arg0: i32) -> (i32, i32) {
    %c0_i32 = arith.constant 0 : i32
    %c0_i32_0 = arith.constant 0 : i32
    %c0_i32_1 = arith.constant 0 : i32
    return %c0_i32, %c0_i32_0 : i32, i32
  }
  func.func @transform_16(%arg0: i32) -> (i32, i32) {
    %c0_i32 = arith.constant 0 : i32
    %c0_i32_0 = arith.constant 0 : i32
    return %arg0, %c0_i32 : i32, i32
  }
  func.func @transform_17(%arg0: i32) -> (i32, i32) {
    %c0_i32 = arith.constant 0 : i32
    %c0_i32_0 = arith.constant 0 : i32
    return %arg0, %c0_i32 : i32, i32
  }
}

</mosaic_0001>

<bundles_post_ra>
// kernel: voice_emotion_forward.1
= control target key start
LH: loop header
LB: loop body
LE: loop exit
PB: predicated region body
PF: predicated region fallthrough
CT: control target
= control target key end

     0   :  { %s5330_s0 = inlined_call_operand.vmem [shape: f32[16,768], index: 0, kind: input, shape index: {}]   ;;  %s5331_s1 = inlined_call_operand.vmem [shape: f32[2,16], index: 1, kind: input, shape index: {}]   ;;  %s5332_s2 = inlined_call_operand.vmem [shape: bf16[768,128], index: 2, kind: input, shape index: {}]   ;;  %s5333_s3 = inlined_call_operand.vmem [shape: f32[1,128], index: 3, kind: input, shape index: {}]   ;;  %s5334_s4 = inlined_call_operand.vmem [shape: f32[1,128], index: 4, kind: input, shape index: {}]   ;;  %s5335_s5 = inlined_call_operand.<no memory space> [shape: f32[1,1], index: 5, kind: input, shape index: {}]   ;;  %s5336_s6 = inlined_call_operand.vmem [shape: bf16[768,512], index: 6, kind: input, shape index: {}]   ;;  %s5337_s7 = inlined_call_operand.vmem [shape: f32[1,512], index: 7, kind: input, shape index: {}]   ;;  %s5338_s8 = inlined_call_operand.vmem [shape: f32[1,512], index: 8, kind: input, shape index: {}]   ;;  %s5339_s9 = inlined_call_operand.vmem [shape: f32[1,512], index: 9, kind: input, shape index: {}]   ;;  %s5340_s10 = inlined_call_operand.vmem [shape: bf16[512,256], index: 10, kind: input, shape index: {}]   ;;  %s5341_s11 = inlined_call_operand.vmem [shape: f32[1,256], index: 11, kind: input, shape index: {}]   ;;  %s5342_s12 = inlined_call_operand.vmem [shape: f32[1,256], index: 12, kind: input, shape index: {}]   ;;  %s5343_s13 = inlined_call_operand.vmem [shape: f32[1,256], index: 13, kind: input, shape index: {}]   ;;  %s5344_s14 = inlined_call_operand.vmem [shape: bf16[256,128], index: 14, kind: input, shape index: {}]   ;;  %s5345_s15 = inlined_call_operand.vmem [shape: f32[1,128], index: 15, kind: input, shape index: {}]   ;;  %s5346_s16 = inlined_call_operand.hbm [shape: f32[2,128], index: 16, kind: output, shape index: {0}]   ;;  %s5347_s17 = inlined_call_operand.hbm [shape: f32[2,256], index: 17, kind: output, shape index: {1}]  }
   0x1   :  { %5349 = sst [smem:[#allocation9_spill]] %s5330_s0  ;;  %v23_v0 = vstv %s5335_s5 }
   0x2   :  { %5350 = sst [smem:[#allocation10_spill]] %s5331_s1  ;;  %24 = vst [vmem:[#allocation2] sm:$0x1] %v23_v0 }
   0x3   :  { %25 = vsyncpa [#allocation4], 0  ;;  %v3570_v1 = vld [vmem:[%s5332_s2 + $0x40] sm:$0xff]   ;;  %v3572_v3 = vld [vmem:[%s5332_s2 + $0x48] sm:$0xff]   ;;  %s5351_s5 = sld [smem:[#allocation9_spill]] }
   0x4   :  { %v3571_v2 = vld [vmem:[%s5332_s2] sm:$0xff]   ;;  %3451 = vmatprep.subr.bf16.mxu0 %v3570_v1  ;;  %v3573_v4 = vld [vmem:[%s5332_s2 + $0x8] sm:$0xff]   ;;  %v3574_v5 = vld [vmem:[%s5332_s2 + $0x50] sm:$0xff]  }
   0x5   :  { %3452 = vmatpush3.bf16.msra.mxu0 %v3571_v2  ;;  %v3575_v6 = vld [vmem:[%s5332_s2 + $0x10] sm:$0xff]   ;;  %v3576_v7 = vld [vmem:[%s5332_s2 + $0x58] sm:$0xff]   ;;  %v3578_v9 = vld [vmem:[%s5332_s2 + $0x60] sm:$0xff]  }
   0x6   :  { %3453 = vmatprep.subr.bf16.mxu0 %v3572_v3  ;;  %v3577_v8 = vld [vmem:[%s5332_s2 + $0x18] sm:$0xff]   ;;  %v3579_v10 = vld [vmem:[%s5332_s2 + $0x20] sm:$0xff]   ;;  %v3580_v11 = vld [vmem:[%s5332_s2 + $0x68] sm:$0xff]  }
   0x7   :  { %v3581_v15 = vld [vmem:[%s5332_s2 + $0x28] sm:$0xff]   ;;  %v3582_v16 = vld [vmem:[%s5332_s2 + $0x70] sm:$0xff]   ;;  %v3584_v18 = vld [vmem:[%s5332_s2 + $0x78] sm:$0xff]  }
   0x8   :  { %v3583_v17 = vld [vmem:[%s5332_s2 + $0x30] sm:$0xff]   ;;  %v3585_v19 = vld [vmem:[%s5332_s2 + $0x38] sm:$0xff]   ;;  %v3586_v22 = vld [vmem:[%s5332_s2 + $0xc0] sm:$0xff]  }
   0x9   :  { %3454 = vmatpush3.bf16.msra.mxu0 %v3573_v4  ;;  %v61_v12 = vld [vmem:[%s5351_s5 + $0x8] sm:$0xff]  ;;  %v67_v13 = vld [vmem:[%s5351_s5 + $0x38] sm:$0xff]  ;;  %v60_v20 = vld [vmem:[%s5351_s5] sm:$0xff] }
   0xa   :  { %3455 = vmatprep.subr.bf16.mxu0 %v3574_v5  ;;  %v4215_v14 = vpack.c.bf16 %v67_v13, %v61_v12  ;;  %v66_v21 = vld [vmem:[%s5351_s5 + $0x30] sm:$0xff]  ;;  %v3587_v24 = vld [vmem:[%s5332_s2 + $0x80] sm:$0xff]   ;;  %v3588_v25 = vld [vmem:[%s5332_s2 + $0xc8] sm:$0xff]  }
   0xb   :  { %v4242_v23 = vpack.c.bf16 %v66_v21, %v60_v20  ;;  %v63_v26 = vld [vmem:[%s5351_s5 + $0x18] sm:$0xff]  ;;  %v69_v27 = vld [vmem:[%s5351_s5 + $0x48] sm:$0xff]  ;;  %v62_v29 = vld [vmem:[%s5351_s5 + $0x10] sm:$0xff] }
   0xc   :  { %501 = vmatprep.mubr.bf16.mxu0 %v4215_v14  ;;  %v75_v28 = vpack.c.bf16 %v69_v27, %v63_v26  ;;  %v68_v30 = vld [vmem:[%s5351_s5 + $0x40] sm:$0xff]  ;;  %v3589_v31 = vld [vmem:[%s5332_s2 + $0x88] sm:$0xff]   ;;  %v3590_v32 = vld [vmem:[%s5332_s2 + $0xd0] sm:$0xff]  }
   0xd   :  { %3456 = vmatpush3.bf16.msra.mxu0 %v3575_v6  ;;  %v74_v33 = vpack.c.bf16 %v68_v30, %v62_v29  ;;  %v3591_v34 = vld [vmem:[%s5332_s2 + $0x90] sm:$0xff]   ;;  %v3592_v35 = vld [vmem:[%s5332_s2 + $0xd8] sm:$0xff]   ;;  %v3594_v37 = vld [vmem:[%s5332_s2 + $0xe0] sm:$0xff]  }
   0xe   :  { %3457 = vmatprep.subr.bf16.mxu0 %v3576_v7  ;;  %772 = vmatprep.subr.bf16.mxu1 %v75_v28  ;;  %v3593_v36 = vld [vmem:[%s5332_s2 + $0x98] sm:$0xff]   ;;  %v3595_v38 = vld [vmem:[%s5332_s2 + $0xa0] sm:$0xff]   ;;  %v3596_v39 = vld [vmem:[%s5332_s2 + $0xe8] sm:$0xff]  }
   0xf   :  { %773 = vmatpush1.bf16.msra.mxu1 %v74_v33  ;;  %v65_v40 = vld [vmem:[%s5351_s5 + $0x28] sm:$0xff]  ;;  %v3598_v42 = vld [vmem:[%s5332_s2 + $0xf0] sm:$0xff]   ;;  %v71_v43 = vld [vmem:[%s5351_s5 + $0x58] sm:$0xff] }
  0x10   :  { %v3597_v41 = vld [vmem:[%s5332_s2 + $0xa8] sm:$0xff]   ;;  %v77_v44 = vpack.c.bf16 %v71_v43, %v65_v40  ;;  %v3599_v45 = vld [vmem:[%s5332_s2 + $0xb0] sm:$0xff]   ;;  %v3600_v46 = vld [vmem:[%s5332_s2 + $0xf8] sm:$0xff]  }
  0x11   :  { %3458 = vmatpush3.bf16.msra.mxu0 %v3577_v8  ;;  %v3601_v47 = vld [vmem:[%s5332_s2 + $0xb8] sm:$0xff]   ;;  %v3602_v48 = vld [vmem:[%s5332_s2 + $0x140] sm:$0xff]   ;;  %v3604_v50 = vld [vmem:[%s5332_s2 + $0x148] sm:$0xff]  }
  0x12   :  { %3459 = vmatprep.subr.bf16.mxu0 %v3578_v9  ;;  %813 = vmatprep.subr.bf16.mxu1 %v77_v44  ;;  %v3603_v49 = vld [vmem:[%s5332_s2 + $0x100] sm:$0xff]   ;;  %v3605_v51 = vld [vmem:[%s5332_s2 + $0x108] sm:$0xff]   ;;  %v3606_v52 = vld [vmem:[%s5332_s2 + $0x150] sm:$0xff]  }
  0x13   :  { %v3607_v53 = vld [vmem:[%s5332_s2 + $0x110] sm:$0xff]   ;;  %v3608_v54 = vld [vmem:[%s5332_s2 + $0x158] sm:$0xff]   ;;  %v3610_v56 = vld [vmem:[%s5332_s2 + $0x160] sm:$0xff]  }
  0x14   :  { %v3609_v55 = vld [vmem:[%s5332_s2 + $0x118] sm:$0xff]   ;;  %v3611_v57 = vld [vmem:[%s5332_s2 + $0x120] sm:$0xff]   ;;  %v3612_v58 = vld [vmem:[%s5332_s2 + $0x168] sm:$0xff]  }
  0x15   :  { %3460 = vmatpush3.bf16.msra.mxu0 %v3579_v10  ;;  %v3613_v59 = vld [vmem:[%s5332_s2 + $0x128] sm:$0xff]   ;;  %v3614_v60 = vld [vmem:[%s5332_s2 + $0x170] sm:$0xff]   ;;  %v3616_v62 = vld [vmem:[%s5332_s2 + $0x178] sm:$0xff]  }
  0x16   :  { %3461 = vmatprep.subr.bf16.mxu0 %v3580_v11  ;;  %v3615_v61 = vld [vmem:[%s5332_s2 + $0x130] sm:$0xff]   ;;  %v3617_v63 = vld [vmem:[%s5332_s2 + $0x138] sm:$0xff]   ;;  %v64_v0 = vld [vmem:[%s5351_s5 + $0x20] sm:$0xff] }
  0x17   :  { %v70_v1 = vld [vmem:[%s5351_s5 + $0x50] sm:$0xff] }
  0x18   :  { %v4362_v2 = vpack.c.bf16 %v70_v1, %v64_v0 }
  0x19   :  { %3462 = vmatpush3.bf16.msra.mxu0 %v3581_v15 }
  0x1a   :  { %3463 = vmatprep.subr.bf16.mxu0 %v3582_v16 }
  0x1d   :  { %3464 = vmatpush3.bf16.msra.mxu0 %v3583_v17 }
  0x1e   :  { %3465 = vmatprep.subr.bf16.mxu0 %v3584_v18 }
  0x21   :  { %3466 = vmatpush3.bf16.msra.mxu0 %v3585_v19 }
  0x22   :  { %3473 = vmatprep.subr.bf16.mxu0 %v3586_v22 }
  0x24   :  { %502 = vmatmul.mubr.bf16.vlgmr.msra.gmra.mrb[0].mxu0 %v4242_v23 }
  0x25   :  { %3474 = vmatpush3.bf16.msra.mxu0 %v3587_v24  ;;  %542 = vmatprep.mubr.bf16.mxu0 %v75_v28 }
  0x26   :  { %3475 = vmatprep.subr.bf16.mxu0 %v3588_v25 }
  0x29   :  { %3476 = vmatpush3.bf16.msra.mxu0 %v3589_v31 }
  0x2a   :  { %3477 = vmatprep.subr.bf16.mxu0 %v3590_v32 }
  0x2d   :  { %3478 = vmatpush3.bf16.msra.mxu0 %v3591_v34 }
  0x2e   :  { %3479 = vmatprep.subr.bf16.mxu0 %v3592_v35 }
  0x31   :  { %3480 = vmatpush3.bf16.msra.mxu0 %v3593_v36 }
  0x32   :  { %3481 = vmatprep.subr.bf16.mxu0 %v3594_v37 }
  0x35   :  { %3482 = vmatpush3.bf16.msra.mxu0 %v3595_v38 }
  0x36   :  { %3483 = vmatprep.subr.bf16.mxu0 %v3596_v39 }
  0x39   :  { %3484 = vmatpush3.bf16.msra.mxu0 %v3597_v41 }
  0x3a   :  { %3485 = vmatprep.subr.bf16.mxu0 %v3598_v42 }
  0x3d   :  { %3486 = vmatpush3.bf16.msra.mxu0 %v3599_v45 }
  0x3e   :  { %3487 = vmatprep.subr.bf16.mxu0 %v3600_v46 }
  0x41   :  { %3488 = vmatpush3.bf16.msra.mxu0 %v3601_v47 }
  0x42   :  { %3495 = vmatprep.subr.bf16.mxu0 %v3602_v48 }
  0x44   :  { %543 = vmatmul.mubr.bf16.vlgmr.msra.gmra.mrb[4].mxu0 %v74_v33 }
  0x45   :  { %3496 = vmatpush3.bf16.msra.mxu0 %v3603_v49  ;;  %583 = vmatprep.mubr.bf16.mxu0 %v77_v44 }
  0x46   :  { %3497 = vmatprep.subr.bf16.mxu0 %v3604_v50 }
  0x49   :  { %3498 = vmatpush3.bf16.msra.mxu0 %v3605_v51 }
  0x4a   :  { %3499 = vmatprep.subr.bf16.mxu0 %v3606_v52 }
  0x4d   :  { %3500 = vmatpush3.bf16.msra.mxu0 %v3607_v53 }
  0x4e   :  { %3501 = vmatprep.subr.bf16.mxu0 %v3608_v54 }
  0x51   :  { %3502 = vmatpush3.bf16.msra.mxu0 %v3609_v55 }
  0x52   :  { %3503 = vmatprep.subr.bf16.mxu0 %v3610_v56 }
  0x55   :  { %3504 = vmatpush3.bf16.msra.mxu0 %v3611_v57 }
  0x56   :  { %3505 = vmatprep.subr.bf16.mxu0 %v3612_v58 }
  0x59   :  { %3506 = vmatpush3.bf16.msra.mxu0 %v3613_v59 }
  0x5a   :  { %3507 = vmatprep.subr.bf16.mxu0 %v3614_v60 }
  0x5d   :  { %3508 = vmatpush3.bf16.msra.mxu0 %v3615_v61 }
  0x5e   :  { %3509 = vmatprep.subr.bf16.mxu0 %v3616_v62 }
  0x61   :  { %3510 = vmatpush3.bf16.msra.mxu0 %v3617_v63 }
  0x62   :  { %731 = vmatprep.subr.bf16.mxu0 %v4215_v14 }
  0x64   :  { %584 = vmatmul.mubr.bf16.vlgmr.msra.gmra.mrb[8].mxu0 %v4362_v2 }
  0x65   :  { %732 = vmatpush1.bf16.msra.mxu0 %v4242_v23 }
  0x66   :  { %26 = vsyncpa [#allocation6], 0  ;;  %v3123_v9 = vld [vmem:[%s5333_s3] ss:$0 sm:$0xff]  ;;  %v4080_v33 = vmov 0   ;;  %v624_v39 = vlaneseq  ;;  %vm634_vm0 = vcmask 1041409  }
  0x67   :  { %v3172_v28 = vld [vmem:[%s5334_s4] ss:$0 sm:$0xff]  ;;  %3568 = vset.pattern.permute.xlu1 %v4080_v33  ;;  %3569 = vset.pattern.permute.xlu0 %v4080_v33  ;;  %vm637_vm1 = vcmask 58368   ;;  %vm722_vm2 = vcmask 64512   ;;  %s5352_s29 = sld [smem:[#allocation10_spill]]  ;;  %vm727_vm3 = vcmask 130048  }
  0x68   :  { %763 = vmatprep.mubr.bf16.mxu0 %v4080_v33  ;;  %804 = vmatprep.mubr.bf16.mxu1 %v4080_v33  ;;  %v3173_v34 = vld [vmem:[#allocation2] ss:$0 sm:$0xff]  ;;  %v625_v40 = vand.u32 127, %v624_v39  ;;  %v4377_v41 = vshrl.u32 %v624_v39, 7  ;;  %v3653_v39 = vld [vmem:[%s5336_s6 + $0xac] ss:$16 sps:$4 sm:$0xff]  }
  0x69   :  { %vm2286_vm4 = vcmask 1041408  }
  0x6a   :  { %v628_v43 = vsub.s32 %v625_v40, %v4377_v41  ;;  %v4383_v49 = vsub.s32 0, %v4377_v41  ;;  %v4386_v50 = vsub.s32 1, %v4377_v41 }
  0xf7   :  { %v3467_v3 = vpop.f32.mrb[0].mxu0 }
  0xf8   :  { %v3468_v4 = vpop.f32.mrb[1].mxu0 }
  0xf9   :  { %v3469_v5 = vadd.f32 %v3468_v4, %v3467_v3  ;;  %v3470_v6 = vpop.f32.mrb[2].mxu0 }
  0xfa   :  { %v3471_v7 = vpop.f32.mrb[3].mxu0 }
  0xfb   :  { %v3472_v8 = vadd.f32 %v3471_v7, %v3470_v6  ;;  %v504_v12 = vadd.f32 %v3469_v5, %v3123_v9 }
  0xfd   :  { %v507_v16 = vadd.f32 %v3472_v8, %v3123_v9  ;;  %v3623_v9 = vld [vmem:[%s5336_s6 + $0xc] ss:$16 sps:$4 sm:$0xff]  }
  0xfe   :  { %2157 = vmatprep.subr.bf16.mxu0 %v3623_v9  ;;  %v3686_v9 = vld [vmem:[%s5336_s6 + $0x164] ss:$16 sps:$4 sm:$0xff]  }
 0x117   :  { %v3489_v10 = vpop.f32.mrb[4].mxu0 }
 0x118   :  { %v3490_v11 = vpop.f32.mrb[5].mxu0 }
 0x119   :  { %v3491_v13 = vadd.f32 %v3490_v11, %v3489_v10  ;;  %v3492_v14 = vpop.f32.mrb[6].mxu0  ;;  %v711_v10 = vadd.s32 4294967288, %v625_v40  ;;  %v3636_v40 = vld [vmem:[%s5336_s6 + $0x60] ss:$16 sps:$4 sm:$0xff]  }
 0x11a   :  { %v3493_v15 = vpop.f32.mrb[7].mxu0 }
 0x11b   :  { %v545_v17 = vadd.f32 %v3491_v13, %v504_v12  ;;  %v3494_v18 = vadd.f32 %v3493_v15, %v3492_v14  ;;  %v714_v11 = vsub.s32 %v711_v10, %v4377_v41  ;;  %v3693_v10 = vld [vmem:[%s5336_s6 + $0x188] ss:$16 sps:$4 sm:$0xff]  }
 0x11d   :  { %v548_v19 = vadd.f32 %v3494_v18, %v507_v16  ;;  %v724_v18 = vld [vmem:[%s5352_s29] sm:$0x3] }
 0x137   :  { %v3511_v20 = vpop.f32.mrb[8].mxu0 }
 0x138   :  { %v3512_v21 = vpop.f32.mrb[9].mxu0 }
 0x139   :  { %v3513_v22 = vadd.f32 %v3512_v21, %v3511_v20  ;;  %v3514_v23 = vpop.f32.mrb[10].mxu0 }
 0x13a   :  { %v3515_v24 = vpop.f32.mrb[11].mxu0 }
 0x13b   :  { %v586_v25 = vadd.f32 %v3513_v22, %v545_v17  ;;  %v3516_v26 = vadd.f32 %v3515_v24, %v3514_v23  ;;  %v3620_v24 = vld [vmem:[%s5336_s6 + $0x4] ss:$16 sps:$4 sm:$0xff]  }
 0x13d   :  { %4018 = vtanh.f32 %v586_v25  ;;  %v589_v27 = vadd.f32 %v3516_v26, %v548_v19  ;;  %v3621_v25 = vld [vmem:[%s5336_s6 + $0x8] ss:$16 sps:$4 sm:$0xff]   ;;  %v3629_v26 = vld [vmem:[%s5336_s6 + $0x2c] ss:$16 sps:$4 sm:$0xff]  }
 0x13f   :  { %4020 = vtanh.f32 %v589_v27  ;;  %v3627_v27 = vld [vmem:[%s5336_s6 + $0x28] ss:$16 sps:$4 sm:$0xff]  }
 0x147   :  { %v4019_v29 = vpop.eup %4018 }
 0x148   :  { %v601_v30 = vmul.f32 %v4019_v29, %v3172_v28  ;;  %v3618_v29 = vld [vmem:[%s5336_s6] ss:$16 sps:$4 sm:$0xff]  }
 0x149   :  { %v4021_v31 = vpop.eup %4020 }
 0x14a   :  { %603 = vadd.xlane.f32.xlu0 %v601_v30  ;;  %v602_v32 = vmul.f32 %v4021_v31, %v3172_v28  ;;  %v3635_v28 = vld [vmem:[%s5336_s6 + $0x4c] ss:$16 sps:$4 sm:$0xff]   ;;  %v3633_v30 = vld [vmem:[%s5336_s6 + $0x48] ss:$16 sps:$4 sm:$0xff]  }
 0x14b   :  { %v3641_v31 = vld [vmem:[%s5336_s6 + $0x6c] ss:$16 sps:$4 sm:$0xff]  }
 0x14e   :  { %605 = vadd.xlane.f32.xlu0 %v602_v32  ;;  %v3624_v32 = vld [vmem:[%s5336_s6 + $0x20] ss:$16 sps:$4 sm:$0xff]  }
 0x1d7   :  { %v604_v35 = vpop.xlane.xlu0 %603 }
 0x1d8   :  { %v614_v36 = vadd.f32 %v3173_v34, %v604_v35  ;;  %v3647_v35 = vld [vmem:[%s5336_s6 + $0x8c] ss:$16 sps:$4 sm:$0xff]  }
 0x1da   :  { %619 = vperm.xlu1 %3568, %v614_v36  }
 0x1db   :  { %v606_v37 = vpop.xlane.xlu0 %605 }
 0x1dc   :  { %v615_v38 = vadd.f32 %v3173_v34, %v606_v37  ;;  %v3639_v34 = vld [vmem:[%s5336_s6 + $0x68] ss:$16 sps:$4 sm:$0xff]   ;;  %v3638_v37 = vld [vmem:[%s5336_s6 + $0x64] ss:$16 sps:$4 sm:$0xff]  }
 0x1de   :  { %622 = vperm.xlu1 %3568, %v615_v38  }
 0x259   :  { %v620_v42 = vpop.permute.xlu1 %619 }
 0x25a   :  { %v629_v45 = vrot.slane %v620_v42, %v628_v43  ;;  %v3644_v42 = vld [vmem:[%s5336_s6 + $0x84] ss:$16 sps:$4 sm:$0xff]  }
 0x25d   :  { %v623_v44 = vpop.permute.xlu1 %622 }
 0x25e   :  { %v633_v46 = vrot.slane %v623_v44, %v628_v43  ;;  %v3659_v44 = vld [vmem:[%s5336_s6 + $0xcc] ss:$16 sps:$4 sm:$0xff]  }
 0x260   :  { %v635_v47 = vsel %vm634_vm0, %v633_v46, %v629_v45  ;;  %v3642_v45 = vld [vmem:[%s5336_s6 + $0x80] ss:$16 sps:$4 sm:$0xff]   ;;  %v3650_v46 = vld [vmem:[%s5336_s6 + $0xa4] ss:$16 sps:$4 sm:$0xff]  }
 0x261   :  { %v638_v48 = vsel %vm637_vm1, %v635_v47, -inf  ;;  %v3657_v47 = vld [vmem:[%s5336_s6 + $0xc8] ss:$16 sps:$4 sm:$0xff]  }
 0x262   :  { %639 = vmax.xlane.f32.xlu0 %v638_v48  ;;  %v3665_v48 = vld [vmem:[%s5336_s6 + $0xec] ss:$16 sps:$4 sm:$0xff]  }
 0x2ef   :  { %v640_v51 = vpop.xlane.xlu0 %639 }
 0x2f0   :  { %v645_v52 = vrot.slane %v640_v51, %v4383_v49  ;;  %v649_v53 = vrot.slane %v640_v51, %v4386_v50  ;;  %v3648_v51 = vld [vmem:[%s5336_s6 + $0xa0] ss:$16 sps:$4 sm:$0xff]  }
 0x2f2   :  { %v652_v54 = vsub.f32 %v614_v36, %v645_v52  ;;  %v653_v55 = vsub.f32 %v615_v38, %v649_v53  ;;  %v3630_v36 = vld [vmem:[%s5336_s6 + $0x40] ss:$16 sps:$4 sm:$0xff]   ;;  %v3645_v38 = vld [vmem:[%s5336_s6 + $0x88] ss:$16 sps:$4 sm:$0xff]   ;;  %v3656_v52 = vld [vmem:[%s5336_s6 + $0xc4] ss:$16 sps:$4 sm:$0xff]  }
 0x2f3   :  { %v3663_v53 = vld [vmem:[%s5336_s6 + $0xe8] ss:$16 sps:$4 sm:$0xff]  }
 0x2f4   :  { %v654_v56 = vmul.f32 1.442695, %v652_v54  ;;  %v656_v57 = vmul.f32 1.442695, %v653_v55  ;;  %v3671_v54 = vld [vmem:[%s5336_s6 + $0x10c] ss:$16 sps:$4 sm:$0xff]  }
 0x2f5   :  { %v3654_v55 = vld [vmem:[%s5336_s6 + $0xc0] ss:$16 sps:$4 sm:$0xff]  }
 0x2f6   :  { %4022 = vpow2.f32 %v654_v56  ;;  %v3662_v56 = vld [vmem:[%s5336_s6 + $0xe4] ss:$16 sps:$4 sm:$0xff]  }
 0x2f7   :  { %4024 = vpow2.f32 %v656_v57  ;;  %v3669_v57 = vld [vmem:[%s5336_s6 + $0x108] ss:$16 sps:$4 sm:$0xff]  }
 0x300   :  { %v4023_v58 = vpop.eup %4022 }
 0x301   :  { %v4025_v59 = vpop.eup %4024  ;;  %661 = vperm.xlu1 %3568, %v4023_v58  }
 0x302   :  { %664 = vperm.xlu0 %3569, %v4025_v59  }
 0x380   :  { %v662_v60 = vpop.permute.xlu1 %661 }
 0x381   :  { %v665_v61 = vpop.permute.xlu0 %664  ;;  %v669_v62 = vrot.slane %v662_v60, %v628_v43  ;;  %v3668_v60 = vld [vmem:[%s5336_s6 + $0x104] ss:$16 sps:$4 sm:$0xff]  }
 0x382   :  { %v673_v63 = vrot.slane %v665_v61, %v628_v43  ;;  %v3675_v61 = vld [vmem:[%s5336_s6 + $0x128] ss:$16 sps:$4 sm:$0xff]  }
 0x384   :  { %v674_v0 = vsel %vm634_vm0, %v673_v63, %v669_v62  ;;  %v3683_v62 = vld [vmem:[%s5336_s6 + $0x14c] ss:$16 sps:$4 sm:$0xff]   ;;  %v3666_v63 = vld [vmem:[%s5336_s6 + $0x100] ss:$16 sps:$4 sm:$0xff]  }
 0x385   :  { %v676_v1 = vsel %vm637_vm1, %v674_v0, 0.0  ;;  %v3674_v0 = vld [vmem:[%s5336_s6 + $0x124] ss:$16 sps:$4 sm:$0xff]  }
 0x386   :  { %677 = vadd.xlane.f32.xlu1 %v676_v1  ;;  %v3681_v1 = vld [vmem:[%s5336_s6 + $0x148] ss:$16 sps:$4 sm:$0xff]  }
 0x413   :  { %v678_v3 = vpop.xlane.xlu1 %677 }
 0x414   :  { %4026 = vrcp.f32 %v678_v3  ;;  %v3689_v3 = vld [vmem:[%s5336_s6 + $0x16c] ss:$16 sps:$4 sm:$0xff]  }
 0x41e   :  { %v4027_v4 = vpop.eup %4026 }
 0x41f   :  { %v688_v5 = vrot.slane %v4027_v4, %v4386_v50  ;;  %v684_v6 = vrot.slane %v4027_v4, %v4383_v49  ;;  %v3672_v4 = vld [vmem:[%s5336_s6 + $0x120] ss:$16 sps:$4 sm:$0xff]  }
 0x421   :  { %v692_v7 = vmul.f32 %v4025_v59, %v688_v5  ;;  %v691_v8 = vmul.f32 %v4023_v58, %v684_v6  ;;  %v3677_v58 = vld [vmem:[%s5336_s6 + $0x12c] ss:$16 sps:$4 sm:$0xff]   ;;  %v3660_v59 = vld [vmem:[%s5336_s6 + $0xe0] ss:$16 sps:$4 sm:$0xff]   ;;  %v3680_v5 = vld [vmem:[%s5336_s6 + $0x144] ss:$16 sps:$4 sm:$0xff]  }
 0x422   :  { %v3687_v6 = vld [vmem:[%s5336_s6 + $0x168] ss:$16 sps:$4 sm:$0xff]  }
 0x423   :  { %699 = vperm.xlu0 %3569, %v692_v7   ;;  %696 = vperm.xlu1 %3568, %v691_v8   ;;  %v3695_v7 = vld [vmem:[%s5336_s6 + $0x18c] ss:$16 sps:$4 sm:$0xff]   ;;  %v3678_v8 = vld [vmem:[%s5336_s6 + $0x140] ss:$16 sps:$4 sm:$0xff]  }
 0x4a2   :  { %v700_v12 = vpop.permute.xlu0 %699  ;;  %v697_v13 = vpop.permute.xlu1 %696 }
 0x4a3   :  { %v708_v14 = vrot.slane %v700_v12, %v628_v43  ;;  %v719_v15 = vrot.slane %v700_v12, %v714_v11  ;;  %v704_v16 = vrot.slane %v697_v13, %v628_v43  ;;  %v715_v17 = vrot.slane %v697_v13, %v714_v11  ;;  %v3651_v43 = vld [vmem:[%s5336_s6 + $0xa8] ss:$16 sps:$4 sm:$0xff]   ;;  %v3701_v11 = vld [vmem:[%s5336_s6 + $0x1ac] ss:$16 sps:$4 sm:$0xff]   ;;  %v3684_v12 = vld [vmem:[%s5336_s6 + $0x160] ss:$16 sps:$4 sm:$0xff]  }
 0x4a4   :  { %v3692_v13 = vld [vmem:[%s5336_s6 + $0x184] ss:$16 sps:$4 sm:$0xff]  }
 0x4a5   :  { %v709_v19 = vsel %vm634_vm0, %v708_v14, %v704_v16  ;;  %v720_v20 = vsel %vm634_vm0, %v719_v15, %v715_v17  ;;  %v3699_v14 = vld [vmem:[%s5336_s6 + $0x1a8] ss:$16 sps:$4 sm:$0xff]   ;;  %v3707_v15 = vld [vmem:[%s5336_s6 + $0x1cc] ss:$16 sps:$4 sm:$0xff]   ;;  %v3690_v16 = vld [vmem:[%s5336_s6 + $0x180] ss:$16 sps:$4 sm:$0xff]  }
 0x4a6   :  { %v723_v21 = vsel %vm722_vm2, %v709_v19, %v720_v20  ;;  %v3698_v17 = vld [vmem:[%s5336_s6 + $0x1a4] ss:$16 sps:$4 sm:$0xff]   ;;  %v3696_v19 = vld [vmem:[%s5336_s6 + $0x1a0] ss:$16 sps:$4 sm:$0xff]  }
 0x4a7   :  { %v725_v22 = vmul.f32 %v724_v18, %v723_v21  ;;  %v3705_v18 = vld [vmem:[%s5336_s6 + $0x1c8] ss:$16 sps:$4 sm:$0xff]   ;;  %v3704_v20 = vld [vmem:[%s5336_s6 + $0x1c4] ss:$16 sps:$4 sm:$0xff]   ;;  %v3702_v21 = vld [vmem:[%s5336_s6 + $0x1c0] ss:$16 sps:$4 sm:$0xff]  }
 0x4a9   :  { %v726_v23 = vpack.c.bf16 %v725_v22, %v725_v22  ;;  %v3710_v22 = vld [vmem:[%s5336_s6 + $0x1e4] ss:$16 sps:$4 sm:$0xff]  }
 0x4ab   :  { %3174 = vmatmul.mubr.msk.bf16.vlgmr.msra.gmra.mrb[12].mxu0 %vm727_vm3, %v726_v23  ;;  %3175 = vmatmul.mubr.msk.bf16.vlgmr.msra.gmra.mrb[0].mxu1 %vm727_vm3, %v726_v23 }
 0x4ac   :  { %814 = vmatpush1.bf16.msra.mxu1 %v4362_v2  ;;  %845 = vmatprep.mubr.bf16.mxu1 %v4080_v33  ;;  %v3626_v2 = vld [vmem:[%s5336_s6 + $0x24] ss:$16 sps:$4 sm:$0xff]  }
 0x4ad   :  { %2034 = vmatprep.subr.bf16.mxu1 %v3620_v24  ;;  %2158 = vmatpush1.bf16.msra.mxu0 %v3621_v25  ;;  %v3632_v33 = vld [vmem:[%s5336_s6 + $0x44] ss:$16 sps:$4 sm:$0xff]   ;;  %v3708_v24 = vld [vmem:[%s5336_s6 + $0x1e0] ss:$16 sps:$4 sm:$0xff]   ;;  %v3711_v25 = vld [vmem:[%s5336_s6 + $0x1e8] ss:$16 sps:$4 sm:$0xff]  }
 0x4ae   :  { %2159 = vmatprep.subr.bf16.mxu0 %v3629_v26  ;;  %v3716_v26 = vld [vmem:[%s5336_s6 + $0x204] ss:$16 sps:$4 sm:$0xff]  }
 0x4b1   :  { %2160 = vmatpush1.bf16.msra.mxu0 %v3627_v27  ;;  %v3719_v27 = vld [vmem:[%s5336_s6 + $0x20c] ss:$16 sps:$4 sm:$0xff]  }
 0x4b2   :  { %2161 = vmatprep.subr.bf16.mxu0 %v3635_v28 }
 0x4b3   :  { %3176 = vmatmul.mubr.msk.bf16.vlgmr.msra.gmra.mrb[4].mxu1 %vm727_vm3, %v726_v23  ;;  %v3713_v23 = vld [vmem:[%s5336_s6 + $0x1ec] ss:$16 sps:$4 sm:$0xff]  }
 0x4b4   :  { %2035 = vmatpush1.bf16.msra.mxu1 %v3618_v29 }
 0x4b5   :  { %2036 = vmatprep.subr.bf16.mxu1 %v3626_v2  ;;  %2162 = vmatpush1.bf16.msra.mxu0 %v3633_v30 }
 0x4b6   :  { %2163 = vmatprep.subr.bf16.mxu0 %v3641_v31 }
 0x4b8   :  { %2037 = vmatpush1.bf16.msra.mxu1 %v3624_v32 }
 0x4b9   :  { %2038 = vmatprep.subr.bf16.mxu1 %v3632_v33  ;;  %2164 = vmatpush1.bf16.msra.mxu0 %v3639_v34  ;;  %v3714_v34 = vld [vmem:[%s5336_s6 + $0x200] ss:$16 sps:$4 sm:$0xff]  }
 0x4ba   :  { %2165 = vmatprep.subr.bf16.mxu0 %v3647_v35  ;;  %v3717_v35 = vld [vmem:[%s5336_s6 + $0x208] ss:$16 sps:$4 sm:$0xff]  }
 0x4bc   :  { %2039 = vmatpush1.bf16.msra.mxu1 %v3630_v36 }
 0x4bd   :  { %2040 = vmatprep.subr.bf16.mxu1 %v3638_v37  ;;  %2166 = vmatpush1.bf16.msra.mxu0 %v3645_v38 }
 0x4be   :  { %2167 = vmatprep.subr.bf16.mxu0 %v3653_v39  ;;  %v3722_v39 = vld [vmem:[%s5336_s6 + $0x224] ss:$16 sps:$4 sm:$0xff]  }
 0x4c0   :  { %2041 = vmatpush1.bf16.msra.mxu1 %v3636_v40  ;;  %v3725_v40 = vld [vmem:[%s5336_s6 + $0x22c] ss:$16 sps:$4 sm:$0xff]  }
 0x4c1   :  { %2042 = vmatprep.subr.bf16.mxu1 %v3644_v42  ;;  %2168 = vmatpush1.bf16.msra.mxu0 %v3651_v43  ;;  %v3720_v43 = vld [vmem:[%s5336_s6 + $0x220] ss:$16 sps:$4 sm:$0xff]  }
 0x4c2   :  { %2169 = vmatprep.subr.bf16.mxu0 %v3659_v44  ;;  %v3723_v44 = vld [vmem:[%s5336_s6 + $0x228] ss:$16 sps:$4 sm:$0xff]  }
 0x4c4   :  { %2043 = vmatpush1.bf16.msra.mxu1 %v3642_v45  ;;  %v3728_v45 = vld [vmem:[%s5336_s6 + $0x244] ss:$16 sps:$4 sm:$0xff]  }
 0x4c5   :  { %2044 = vmatprep.subr.bf16.mxu1 %v3650_v46  ;;  %2170 = vmatpush1.bf16.msra.mxu0 %v3657_v47  ;;  %v3731_v46 = vld [vmem:[%s5336_s6 + $0x24c] ss:$16 sps:$4 sm:$0xff]  }
 0x4c6   :  { %2171 = vmatprep.subr.bf16.mxu0 %v3665_v48 }
 0x4c8   :  { %2045 = vmatpush1.bf16.msra.mxu1 %v3648_v51 }
 0x4c9   :  { %2046 = vmatprep.subr.bf16.mxu1 %v3656_v52  ;;  %2172 = vmatpush1.bf16.msra.mxu0 %v3663_v53  ;;  %v3726_v52 = vld [vmem:[%s5336_s6 + $0x240] ss:$16 sps:$4 sm:$0xff]   ;;  %v3729_v53 = vld [vmem:[%s5336_s6 + $0x248] ss:$16 sps:$4 sm:$0xff]  }
 0x4ca   :  { %2173 = vmatprep.subr.bf16.mxu0 %v3671_v54 }
 0x4cc   :  { %2047 = vmatpush1.bf16.msra.mxu1 %v3654_v55  ;;  %v3734_v55 = vld [vmem:[%s5336_s6 + $0x264] ss:$16 sps:$4 sm:$0xff]  }
 0x4cd   :  { %2048 = vmatprep.subr.bf16.mxu1 %v3662_v56  ;;  %2174 = vmatpush1.bf16.msra.mxu0 %v3669_v57  ;;  %v3737_v56 = vld [vmem:[%s5336_s6 + $0x26c] ss:$16 sps:$4 sm:$0xff]   ;;  %v3732_v57 = vld [vmem:[%s5336_s6 + $0x260] ss:$16 sps:$4 sm:$0xff]  }
 0x4ce   :  { %2175 = vmatprep.subr.bf16.mxu0 %v3677_v58  ;;  %v3735_v58 = vld [vmem:[%s5336_s6 + $0x268] ss:$16 sps:$4 sm:$0xff]  }
 0x4d0   :  { %2049 = vmatpush1.bf16.msra.mxu1 %v3660_v59  ;;  %v3740_v59 = vld [vmem:[%s5336_s6 + $0x284] ss:$16 sps:$4 sm:$0xff]  }
 0x4d1   :  { %2050 = vmatprep.subr.bf16.mxu1 %v3668_v60  ;;  %2176 = vmatpush1.bf16.msra.mxu0 %v3675_v61  ;;  %v3743_v60 = vld [vmem:[%s5336_s6 + $0x28c] ss:$16 sps:$4 sm:$0xff]   ;;  %v3738_v61 = vld [vmem:[%s5336_s6 + $0x280] ss:$16 sps:$4 sm:$0xff]  }
 0x4d2   :  { %2177 = vmatprep.subr.bf16.mxu0 %v3683_v62  ;;  %v3741_v62 = vld [vmem:[%s5336_s6 + $0x288] ss:$16 sps:$4 sm:$0xff]  }
 0x4d4   :  { %2051 = vmatpush1.bf16.msra.mxu1 %v3666_v63  ;;  %v3746_v63 = vld [vmem:[%s5336_s6 + $0x2a4] ss:$16 sps:$4 sm:$0xff]  }
 0x4d5   :  { %2052 = vmatprep.subr.bf16.mxu1 %v3674_v0  ;;  %2178 = vmatpush1.bf16.msra.mxu0 %v3681_v1  ;;  %v3749_v0 = vld [vmem:[%s5336_s6 + $0x2ac] ss:$16 sps:$4 sm:$0xff]   ;;  %v3744_v1 = vld [vmem:[%s5336_s6 + $0x2a0] ss:$16 sps:$4 sm:$0xff]  }
 0x4d6   :  { %2179 = vmatprep.subr.bf16.mxu0 %v3689_v3  ;;  %v3747_v3 = vld [vmem:[%s5336_s6 + $0x2a8] ss:$16 sps:$4 sm:$0xff]  }
 0x4d8   :  { %2053 = vmatpush1.bf16.msra.mxu1 %v3672_v4  ;;  %v3752_v4 = vld [vmem:[%s5336_s6 + $0x2c4] ss:$16 sps:$4 sm:$0xff]  }
 0x4d9   :  { %2054 = vmatprep.subr.bf16.mxu1 %v3680_v5  ;;  %2180 = vmatpush1.bf16.msra.mxu0 %v3687_v6  ;;  %v3755_v5 = vld [vmem:[%s5336_s6 + $0x2cc] ss:$16 sps:$4 sm:$0xff]   ;;  %v3750_v6 = vld [vmem:[%s5336_s6 + $0x2c0] ss:$16 sps:$4 sm:$0xff]  }
 0x4da   :  { %2181 = vmatprep.subr.bf16.mxu0 %v3695_v7  ;;  %v3753_v7 = vld [vmem:[%s5336_s6 + $0x2c8] ss:$16 sps:$4 sm:$0xff]  }
 0x4dc   :  { %2055 = vmatpush1.bf16.msra.mxu1 %v3678_v8  ;;  %v3758_v8 = vld [vmem:[%s5336_s6 + $0x2e4] ss:$16 sps:$4 sm:$0xff]  }
 0x4dd   :  { %2056 = vmatprep.subr.bf16.mxu1 %v3686_v9  ;;  %2182 = vmatpush1.bf16.msra.mxu0 %v3693_v10  ;;  %v3761_v9 = vld [vmem:[%s5336_s6 + $0x2ec] ss:$16 sps:$4 sm:$0xff]   ;;  %v3756_v10 = vld [vmem:[%s5336_s6 + $0x2e0] ss:$16 sps:$4 sm:$0xff]  }
 0x4de   :  { %2183 = vmatprep.subr.bf16.mxu0 %v3701_v11  ;;  %v3759_v11 = vld [vmem:[%s5336_s6 + $0x2e8] ss:$16 sps:$4 sm:$0xff]  }
 0x4e0   :  { %2057 = vmatpush1.bf16.msra.mxu1 %v3684_v12  ;;  %v3764_v12 = vld [vmem:[%s5336_s6 + $0x304] ss:$16 sps:$4 sm:$0xff]  }
 0x4e1   :  { %2058 = vmatprep.subr.bf16.mxu1 %v3692_v13  ;;  %2184 = vmatpush1.bf16.msra.mxu0 %v3699_v14  ;;  %v3767_v13 = vld [vmem:[%s5336_s6 + $0x30c] ss:$16 sps:$4 sm:$0xff]   ;;  %v3762_v14 = vld [vmem:[%s5336_s6 + $0x300] ss:$16 sps:$4 sm:$0xff]  }
 0x4e2   :  { %2185 = vmatprep.subr.bf16.mxu0 %v3707_v15  ;;  %v3765_v15 = vld [vmem:[%s5336_s6 + $0x308] ss:$16 sps:$4 sm:$0xff]  }
 0x4e4   :  { %2059 = vmatpush1.bf16.msra.mxu1 %v3690_v16  ;;  %v3770_v16 = vld [vmem:[%s5336_s6 + $0x324] ss:$16 sps:$4 sm:$0xff]  }
 0x4e5   :  { %2060 = vmatprep.subr.bf16.mxu1 %v3698_v17  ;;  %2186 = vmatpush1.bf16.msra.mxu0 %v3705_v18  ;;  %v3773_v17 = vld [vmem:[%s5336_s6 + $0x32c] ss:$16 sps:$4 sm:$0xff]   ;;  %v3768_v18 = vld [vmem:[%s5336_s6 + $0x320] ss:$16 sps:$4 sm:$0xff]  }
 0x4e6   :  { %2187 = vmatprep.subr.bf16.mxu0 %v3713_v23  ;;  %v3777_v23 = vld [vmem:[%s5336_s6 + $0x348] ss:$16 sps:$4 sm:$0xff]  }
 0x4e8   :  { %2061 = vmatpush1.bf16.msra.mxu1 %v3696_v19  ;;  %v3771_v19 = vld [vmem:[%s5336_s6 + $0x328] ss:$16 sps:$4 sm:$0xff]  }
 0x4e9   :  { %2062 = vmatprep.subr.bf16.mxu1 %v3704_v20  ;;  %2188 = vmatpush1.bf16.msra.mxu0 %v3711_v25  ;;  %v3776_v20 = vld [vmem:[%s5336_s6 + $0x344] ss:$16 sps:$4 sm:$0xff]   ;;  %v3785_v25 = vld [vmem:[%s5336_s6 + $0x36c] ss:$16 sps:$4 sm:$0xff]  }
 0x4ea   :  { %2198 = vmatprep.subr.bf16.mxu0 %v3719_v27  ;;  %v3783_v27 = vld [vmem:[%s5336_s6 + $0x368] ss:$16 sps:$4 sm:$0xff]  }
 0x4ec   :  { %2063 = vmatpush1.bf16.msra.mxu1 %v3702_v21  ;;  %v3779_v21 = vld [vmem:[%s5336_s6 + $0x34c] ss:$16 sps:$4 sm:$0xff]  }
 0x4ed   :  { %2064 = vmatprep.subr.bf16.mxu1 %v3710_v22  ;;  %v3774_v22 = vld [vmem:[%s5336_s6 + $0x340] ss:$16 sps:$4 sm:$0xff]  }
 0x4f0   :  { %2065 = vmatpush1.bf16.msra.mxu1 %v3708_v24  ;;  %v3782_v24 = vld [vmem:[%s5336_s6 + $0x364] ss:$16 sps:$4 sm:$0xff]  }
 0x4f1   :  { %2075 = vmatprep.subr.bf16.mxu1 %v3716_v26  ;;  %v3780_v26 = vld [vmem:[%s5336_s6 + $0x360] ss:$16 sps:$4 sm:$0xff]  }
 0x57e   :  { %v765_v28 = vpop.f32.mrb[12].mxu0  ;;  %v4603_v29 = vpop.f32.mrb[0].mxu1 }
 0x57f   :  { %v767_v2 = vpop.f32.mrb[13].mxu0  ;;  %v808_v30 = vpop.f32.mrb[1].mxu1  ;;  %v854_v36 = vpack.c.bf16 %v765_v28, %v765_v28  ;;  %v3788_v28 = vld [vmem:[%s5336_s6 + $0x384] ss:$16 sps:$4 sm:$0xff]  }
 0x580   :  { %v855_v31 = vpack.c.bf16 %v767_v2, %v767_v2  ;;  %v769_v32 = vpop.f32.mrb[14].mxu0  ;;  %v810_v33 = vpop.f32.mrb[2].mxu1  ;;  %v857_v42 = vpack.c.bf16 %v808_v30, %v808_v30  ;;  %v3791_v2 = vld [vmem:[%s5336_s6 + $0x38c] ss:$16 sps:$4 sm:$0xff]   ;;  %v3786_v30 = vld [vmem:[%s5336_s6 + $0x380] ss:$16 sps:$4 sm:$0xff]  }
 0x581   :  { %v770_v37 = vpop.f32.mrb[15].mxu0  ;;  %v811_v38 = vpop.f32.mrb[3].mxu1  ;;  %v3794_v32 = vld [vmem:[%s5336_s6 + $0x3a4] ss:$16 sps:$4 sm:$0xff]   ;;  %v3797_v33 = vld [vmem:[%s5336_s6 + $0x3ac] ss:$16 sps:$4 sm:$0xff]  }
 0x582   :  { %2066 = vmatprep.mubr.bf16.mxu1 %v855_v31  ;;  %2189 = vmatprep.mubr.bf16.mxu0 %v855_v31  ;;  %v3789_v31 = vld [vmem:[%s5336_s6 + $0x388] ss:$16 sps:$4 sm:$0xff]   ;;  %v3803_v37 = vld [vmem:[%s5336_s6 + $0x3cc] ss:$16 sps:$4 sm:$0xff]   ;;  %v3798_v38 = vld [vmem:[%s5336_s6 + $0x3c0] ss:$16 sps:$4 sm:$0xff]  }
 0x583   :  { %2067 = vmatmul.mubr.bf16.vlgmr.msra.gmra.mrb[8].mxu1 %v854_v36  ;;  %2190 = vmatmul.mubr.bf16.vlgmr.msra.gmra.mrb[16].mxu0 %v854_v36  ;;  %v3800_v36 = vld [vmem:[%s5336_s6 + $0x3c4] ss:$16 sps:$4 sm:$0xff]  }
 0x584   :  { %2076 = vmatpush1.bf16.msra.mxu1 %v3714_v34  ;;  %2199 = vmatpush1.bf16.msra.mxu0 %v3717_v35  ;;  %v3792_v34 = vld [vmem:[%s5336_s6 + $0x3a0] ss:$16 sps:$4 sm:$0xff]   ;;  %v3795_v35 = vld [vmem:[%s5336_s6 + $0x3a8] ss:$16 sps:$4 sm:$0xff]  }
 0x585   :  { %2107 = vmatprep.mubr.bf16.mxu1 %v857_v42  ;;  %2230 = vmatprep.mubr.bf16.mxu0 %v857_v42  ;;  %v3809_v42 = vld [vmem:[%s5336_s6 + $0x3ec] ss:$16 sps:$4 sm:$0xff]  }
 0x586   :  { %v4629_v47 = vpop.f32.mrb[4].mxu1  ;;  %2077 = vmatprep.subr.bf16.mxu1 %v3722_v39  ;;  %2200 = vmatprep.subr.bf16.mxu0 %v3725_v40  ;;  %v3801_v39 = vld [vmem:[%s5336_s6 + $0x3c8] ss:$16 sps:$4 sm:$0xff]   ;;  %v3806_v40 = vld [vmem:[%s5336_s6 + $0x3e4] ss:$16 sps:$4 sm:$0xff]  }
 0x587   :  { %v4631_v48 = vpop.f32.mrb[5].mxu1 }
 0x588   :  { %2078 = vmatpush1.bf16.msra.mxu1 %v3720_v43  ;;  %2201 = vmatpush1.bf16.msra.mxu0 %v3723_v44  ;;  %v851_v51 = vpop.f32.mrb[6].mxu1  ;;  %v3804_v43 = vld [vmem:[%s5336_s6 + $0x3e0] ss:$16 sps:$4 sm:$0xff]   ;;  %v3807_v44 = vld [vmem:[%s5336_s6 + $0x3e8] ss:$16 sps:$4 sm:$0xff]  }
 0x589   :  { %v852_v54 = vpop.f32.mrb[7].mxu1  ;;  %2079 = vmatprep.subr.bf16.mxu1 %v3728_v45  ;;  %2202 = vmatprep.subr.bf16.mxu0 %v3731_v46  ;;  %v3812_v45 = vld [vmem:[%s5336_s6 + $0x404] ss:$16 sps:$4 sm:$0xff]   ;;  %v3815_v46 = vld [vmem:[%s5336_s6 + $0x40c] ss:$16 sps:$4 sm:$0xff]  }
 0x58a   :  { %v3810_v51 = vld [vmem:[%s5336_s6 + $0x400] ss:$16 sps:$4 sm:$0xff]   ;;  %v859_v54 = vpack.c.bf16 %v4631_v48, %v4631_v48  ;;  %v3819_v48 = vld [vmem:[%s5336_s6 + $0x428] ss:$16 sps:$4 sm:$0xff]  }
 0x58c   :  { %2080 = vmatpush1.bf16.msra.mxu1 %v3726_v52  ;;  %2203 = vmatpush1.bf16.msra.mxu0 %v3729_v53  ;;  %v856_v52 = vpack.c.bf16 %v4603_v29, %v4603_v29  ;;  %v3813_v53 = vld [vmem:[%s5336_s6 + $0x408] ss:$16 sps:$4 sm:$0xff]   ;;  %v3816_v29 = vld [vmem:[%s5336_s6 + $0x420] ss:$16 sps:$4 sm:$0xff]  }
 0x58d   :  { %2081 = vmatprep.subr.bf16.mxu1 %v3734_v55  ;;  %2204 = vmatprep.subr.bf16.mxu0 %v3737_v56  ;;  %v3818_v55 = vld [vmem:[%s5336_s6 + $0x424] ss:$16 sps:$4 sm:$0xff]   ;;  %v3821_v56 = vld [vmem:[%s5336_s6 + $0x42c] ss:$16 sps:$4 sm:$0xff]  }
 0x590   :  { %2082 = vmatpush1.bf16.msra.mxu1 %v3732_v57  ;;  %2205 = vmatpush1.bf16.msra.mxu0 %v3735_v58  ;;  %v3824_v57 = vld [vmem:[%s5336_s6 + $0x444] ss:$16 sps:$4 sm:$0xff]   ;;  %v3827_v58 = vld [vmem:[%s5336_s6 + $0x44c] ss:$16 sps:$4 sm:$0xff]  }
 0x591   :  { %2083 = vmatprep.subr.bf16.mxu1 %v3740_v59  ;;  %2206 = vmatprep.subr.bf16.mxu0 %v3743_v60  ;;  %v3822_v59 = vld [vmem:[%s5336_s6 + $0x440] ss:$16 sps:$4 sm:$0xff]   ;;  %v3825_v60 = vld [vmem:[%s5336_s6 + $0x448] ss:$16 sps:$4 sm:$0xff]  }
 0x594   :  { %2084 = vmatpush1.bf16.msra.mxu1 %v3738_v61  ;;  %2207 = vmatpush1.bf16.msra.mxu0 %v3741_v62  ;;  %v3830_v61 = vld [vmem:[%s5336_s6 + $0x464] ss:$16 sps:$4 sm:$0xff]   ;;  %v3833_v62 = vld [vmem:[%s5336_s6 + $0x46c] ss:$16 sps:$4 sm:$0xff]  }
 0x595   :  { %2085 = vmatprep.subr.bf16.mxu1 %v3746_v63  ;;  %2208 = vmatprep.subr.bf16.mxu0 %v3749_v0  ;;  %v3828_v63 = vld [vmem:[%s5336_s6 + $0x460] ss:$16 sps:$4 sm:$0xff]   ;;  %v3831_v0 = vld [vmem:[%s5336_s6 + $0x468] ss:$16 sps:$4 sm:$0xff]  }
 0x598   :  { %2086 = vmatpush1.bf16.msra.mxu1 %v3744_v1  ;;  %2209 = vmatpush1.bf16.msra.mxu0 %v3747_v3  ;;  %v3836_v1 = vld [vmem:[%s5336_s6 + $0x484] ss:$16 sps:$4 sm:$0xff]   ;;  %v3839_v3 = vld [vmem:[%s5336_s6 + $0x48c] ss:$16 sps:$4 sm:$0xff]  }
 0x599   :  { %2087 = vmatprep.subr.bf16.mxu1 %v3752_v4  ;;  %2210 = vmatprep.subr.bf16.mxu0 %v3755_v5  ;;  %v3834_v4 = vld [vmem:[%s5336_s6 + $0x480] ss:$16 sps:$4 sm:$0xff]   ;;  %v3837_v5 = vld [vmem:[%s5336_s6 + $0x488] ss:$16 sps:$4 sm:$0xff]  }
 0x59c   :  { %2088 = vmatpush1.bf16.msra.mxu1 %v3750_v6  ;;  %2211 = vmatpush1.bf16.msra.mxu0 %v3753_v7  ;;  %v3842_v6 = vld [vmem:[%s5336_s6 + $0x4a4] ss:$16 sps:$4 sm:$0xff]   ;;  %v3845_v7 = vld [vmem:[%s5336_s6 + $0x4ac] ss:$16 sps:$4 sm:$0xff]  }
 0x59d   :  { %2089 = vmatprep.subr.bf16.mxu1 %v3758_v8  ;;  %2212 = vmatprep.subr.bf16.mxu0 %v3761_v9  ;;  %v3840_v8 = vld [vmem:[%s5336_s6 + $0x4a0] ss:$16 sps:$4 sm:$0xff]   ;;  %v3843_v9 = vld [vmem:[%s5336_s6 + $0x4a8] ss:$16 sps:$4 sm:$0xff]  }
 0x5a0   :  { %2090 = vmatpush1.bf16.msra.mxu1 %v3756_v10  ;;  %2213 = vmatpush1.bf16.msra.mxu0 %v3759_v11  ;;  %v3848_v10 = vld [vmem:[%s5336_s6 + $0x4c4] ss:$16 sps:$4 sm:$0xff]   ;;  %v3851_v11 = vld [vmem:[%s5336_s6 + $0x4cc] ss:$16 sps:$4 sm:$0xff]  }
 0x5a1   :  { %2091 = vmatprep.subr.bf16.mxu1 %v3764_v12  ;;  %2214 = vmatprep.subr.bf16.mxu0 %v3767_v13  ;;  %v3846_v12 = vld [vmem:[%s5336_s6 + $0x4c0] ss:$16 sps:$4 sm:$0xff]   ;;  %v3849_v13 = vld [vmem:[%s5336_s6 + $0x4c8] ss:$16 sps:$4 sm:$0xff]  }
 0x5a4   :  { %2092 = vmatpush1.bf16.msra.mxu1 %v3762_v14  ;;  %2215 = vmatpush1.bf16.msra.mxu0 %v3765_v15  ;;  %v3854_v14 = vld [vmem:[%s5336_s6 + $0x4e4] ss:$16 sps:$4 sm:$0xff]   ;;  %v3857_v15 = vld [vmem:[%s5336_s6 + $0x4ec] ss:$16 sps:$4 sm:$0xff]  }
 0x5a5   :  { %2093 = vmatprep.subr.bf16.mxu1 %v3770_v16  ;;  %2216 = vmatprep.subr.bf16.mxu0 %v3773_v17  ;;  %v3852_v16 = vld [vmem:[%s5336_s6 + $0x4e0] ss:$16 sps:$4 sm:$0xff]   ;;  %v3855_v17 = vld [vmem:[%s5336_s6 + $0x4e8] ss:$16 sps:$4 sm:$0xff]  }
 0x5a8   :  { %2094 = vmatpush1.bf16.msra.mxu1 %v3768_v18  ;;  %2217 = vmatpush1.bf16.msra.mxu0 %v3771_v19  ;;  %v3860_v18 = vld [vmem:[%s5336_s6 + $0x504] ss:$16 sps:$4 sm:$0xff]   ;;  %v3863_v19 = vld [vmem:[%s5336_s6 + $0x50c] ss:$16 sps:$4 sm:$0xff]  }
 0x5a9   :  { %2095 = vmatprep.subr.bf16.mxu1 %v3776_v20  ;;  %2218 = vmatprep.subr.bf16.mxu0 %v3779_v21  ;;  %v3858_v20 = vld [vmem:[%s5336_s6 + $0x500] ss:$16 sps:$4 sm:$0xff]   ;;  %v3861_v21 = vld [vmem:[%s5336_s6 + $0x508] ss:$16 sps:$4 sm:$0xff]  }
 0x5ac   :  { %2096 = vmatpush1.bf16.msra.mxu1 %v3774_v22  ;;  %2219 = vmatpush1.bf16.msra.mxu0 %v3777_v23  ;;  %v3866_v22 = vld [vmem:[%s5336_s6 + $0x524] ss:$16 sps:$4 sm:$0xff]   ;;  %v3869_v23 = vld [vmem:[%s5336_s6 + $0x52c] ss:$16 sps:$4 sm:$0xff]  }
 0x5ad   :  { %2097 = vmatprep.subr.bf16.mxu1 %v3782_v24  ;;  %2220 = vmatprep.subr.bf16.mxu0 %v3785_v25  ;;  %v3864_v24 = vld [vmem:[%s5336_s6 + $0x520] ss:$16 sps:$4 sm:$0xff]   ;;  %v3867_v25 = vld [vmem:[%s5336_s6 + $0x528] ss:$16 sps:$4 sm:$0xff]  }
 0x5b0   :  { %2098 = vmatpush1.bf16.msra.mxu1 %v3780_v26  ;;  %2221 = vmatpush1.bf16.msra.mxu0 %v3783_v27  ;;  %v3872_v26 = vld [vmem:[%s5336_s6 + $0x544] ss:$16 sps:$4 sm:$0xff]   ;;  %v3875_v27 = vld [vmem:[%s5336_s6 + $0x54c] ss:$16 sps:$4 sm:$0xff]  }
 0x5b1   :  { %2099 = vmatprep.subr.bf16.mxu1 %v3788_v28  ;;  %2222 = vmatprep.subr.bf16.mxu0 %v3791_v2  ;;  %v3870_v28 = vld [vmem:[%s5336_s6 + $0x540] ss:$16 sps:$4 sm:$0xff]   ;;  %v3873_v2 = vld [vmem:[%s5336_s6 + $0x548] ss:$16 sps:$4 sm:$0xff]  }
 0x5b4   :  { %2100 = vmatpush1.bf16.msra.mxu1 %v3786_v30  ;;  %2223 = vmatpush1.bf16.msra.mxu0 %v3789_v31  ;;  %v3878_v30 = vld [vmem:[%s5336_s6 + $0x564] ss:$16 sps:$4 sm:$0xff]   ;;  %v3881_v31 = vld [vmem:[%s5336_s6 + $0x56c] ss:$16 sps:$4 sm:$0xff]  }
 0x5b5   :  { %2101 = vmatprep.subr.bf16.mxu1 %v3794_v32  ;;  %2224 = vmatprep.subr.bf16.mxu0 %v3797_v33  ;;  %v3876_v32 = vld [vmem:[%s5336_s6 + $0x560] ss:$16 sps:$4 sm:$0xff]   ;;  %v3879_v33 = vld [vmem:[%s5336_s6 + $0x568] ss:$16 sps:$4 sm:$0xff]  }
 0x5b8   :  { %2102 = vmatpush1.bf16.msra.mxu1 %v3792_v34  ;;  %2225 = vmatpush1.bf16.msra.mxu0 %v3795_v35  ;;  %v3884_v34 = vld [vmem:[%s5336_s6 + $0x584] ss:$16 sps:$4 sm:$0xff]   ;;  %v3887_v35 = vld [vmem:[%s5336_s6 + $0x58c] ss:$16 sps:$4 sm:$0xff]  }
 0x5b9   :  { %2103 = vmatprep.subr.bf16.mxu1 %v3800_v36  ;;  %2226 = vmatprep.subr.bf16.mxu0 %v3803_v37  ;;  %v3882_v36 = vld [vmem:[%s5336_s6 + $0x580] ss:$16 sps:$4 sm:$0xff]   ;;  %v3885_v37 = vld [vmem:[%s5336_s6 + $0x588] ss:$16 sps:$4 sm:$0xff]  }
 0x5bc   :  { %2104 = vmatpush1.bf16.msra.mxu1 %v3798_v38  ;;  %2227 = vmatpush1.bf16.msra.mxu0 %v3801_v39  ;;  %v3890_v38 = vld [vmem:[%s5336_s6 + $0x5a4] ss:$16 sps:$4 sm:$0xff]   ;;  %v3893_v39 = vld [vmem:[%s5336_s6 + $0x5ac] ss:$16 sps:$4 sm:$0xff]  }
 0x5bd   :  { %2105 = vmatprep.subr.bf16.mxu1 %v3806_v40  ;;  %2228 = vmatprep.subr.bf16.mxu0 %v3809_v42  ;;  %v3888_v40 = vld [vmem:[%s5336_s6 + $0x5a0] ss:$16 sps:$4 sm:$0xff]   ;;  %v3891_v42 = vld [vmem:[%s5336_s6 + $0x5a8] ss:$16 sps:$4 sm:$0xff]  }
 0x5c0   :  { %2106 = vmatpush1.bf16.msra.mxu1 %v3804_v43  ;;  %2229 = vmatpush1.bf16.msra.mxu0 %v3807_v44  ;;  %v3896_v43 = vld [vmem:[%s5336_s6 + $0x5c4] ss:$16 sps:$4 sm:$0xff]   ;;  %v3899_v44 = vld [vmem:[%s5336_s6 + $0x5cc] ss:$16 sps:$4 sm:$0xff]  }
 0x5c1   :  { %2116 = vmatprep.subr.bf16.mxu1 %v3812_v45  ;;  %2239 = vmatprep.subr.bf16.mxu0 %v3815_v46  ;;  %v3894_v45 = vld [vmem:[%s5336_s6 + $0x5c0] ss:$16 sps:$4 sm:$0xff]   ;;  %v3897_v46 = vld [vmem:[%s5336_s6 + $0x5c8] ss:$16 sps:$4 sm:$0xff]  }
 0x5c3   :  { %2108 = vmatmul.mubr.bf16.vlgmr.msra.gmra.mrb[8].mxu1 %v856_v52  ;;  %2231 = vmatmul.mubr.bf16.vlgmr.msra.gmra.mrb[16].mxu0 %v856_v52  ;;  %v3905_v52 = vld [vmem:[%s5336_s6 + $0x5ec] ss:$16 sps:$4 sm:$0xff]  }
 0x5c4   :  { %2117 = vmatpush1.bf16.msra.mxu1 %v3810_v51  ;;  %2148 = vmatprep.mubr.bf16.mxu1 %v859_v54  ;;  %v3902_v51 = vld [vmem:[%s5336_s6 + $0x5e4] ss:$16 sps:$4 sm:$0xff]  }
 0x5c5   :  { %2240 = vmatpush1.bf16.msra.mxu0 %v3813_v53  ;;  %2271 = vmatprep.mubr.bf16.mxu0 %v859_v54  ;;  %v3900_v53 = vld [vmem:[%s5336_s6 + $0x5e0] ss:$16 sps:$4 sm:$0xff]   ;;  %v3903_v54 = vld [vmem:[%s5336_s6 + $0x5e8] ss:$16 sps:$4 sm:$0xff]  }
 0x5c6   :  { %2118 = vmatprep.subr.bf16.mxu1 %v3818_v55  ;;  %2241 = vmatprep.subr.bf16.mxu0 %v3821_v56  ;;  %v858_v55 = vpack.c.bf16 %v4629_v47, %v4629_v47  ;;  %v1052_v56 = vld [vmem:[%s5337_s7] sm:$0xf] }
 0x5c8   :  { %2119 = vmatpush1.bf16.msra.mxu1 %v3816_v29  ;;  %v4997_v29 = vsub.s32 2, %v4377_v41 }
 0x5c9   :  { %2242 = vmatpush1.bf16.msra.mxu0 %v3819_v48  ;;  %2120 = vmatprep.subr.bf16.mxu1 %v3824_v57  ;;  %v5000_v48 = vsub.s32 3, %v4377_v41  ;;  %v1057_v57 = vrot.slane %v1052_v56, %v4383_v49 }
 0x5ca   :  { %2243 = vmatprep.subr.bf16.mxu0 %v3827_v58  ;;  %v1065_v58 = vrot.slane %v1052_v56, %v4997_v29 }
 0x5cb   :  { %v1069_v47 = vrot.slane %v1052_v56, %v5000_v48 }
 0x5cc   :  { %2121 = vmatpush1.bf16.msra.mxu1 %v3822_v59  ;;  %v1061_v59 = vrot.slane %v1052_v56, %v4386_v50 }
 0x5cd   :  { %2244 = vmatpush1.bf16.msra.mxu0 %v3825_v60  ;;  %2122 = vmatprep.subr.bf16.mxu1 %v3830_v61 }
 0x5ce   :  { %2245 = vmatprep.subr.bf16.mxu0 %v3833_v62 }
 0x5d0   :  { %2123 = vmatpush1.bf16.msra.mxu1 %v3828_v63 }
 0x5d1   :  { %2246 = vmatpush1.bf16.msra.mxu0 %v3831_v0  ;;  %2124 = vmatprep.subr.bf16.mxu1 %v3836_v1 }
 0x5d2   :  { %2247 = vmatprep.subr.bf16.mxu0 %v3839_v3 }
 0x5d4   :  { %2125 = vmatpush1.bf16.msra.mxu1 %v3834_v4 }
 0x5d5   :  { %2248 = vmatpush1.bf16.msra.mxu0 %v3837_v5  ;;  %2126 = vmatprep.subr.bf16.mxu1 %v3842_v6 }
 0x5d6   :  { %2249 = vmatprep.subr.bf16.mxu0 %v3845_v7 }
 0x5d8   :  { %2127 = vmatpush1.bf16.msra.mxu1 %v3840_v8 }
 0x5d9   :  { %2250 = vmatpush1.bf16.msra.mxu0 %v3843_v9  ;;  %2128 = vmatprep.subr.bf16.mxu1 %v3848_v10 }
 0x5da   :  { %2251 = vmatprep.subr.bf16.mxu0 %v3851_v11 }
 0x5dc   :  { %2129 = vmatpush1.bf16.msra.mxu1 %v3846_v12 }
 0x5dd   :  { %2252 = vmatpush1.bf16.msra.mxu0 %v3849_v13  ;;  %2130 = vmatprep.subr.bf16.mxu1 %v3854_v14 }
 0x5de   :  { %2253 = vmatprep.subr.bf16.mxu0 %v3857_v15 }
 0x5e0   :  { %2131 = vmatpush1.bf16.msra.mxu1 %v3852_v16 }
 0x5e1   :  { %2254 = vmatpush1.bf16.msra.mxu0 %v3855_v17  ;;  %2132 = vmatprep.subr.bf16.mxu1 %v3860_v18 }
 0x5e2   :  { %2255 = vmatprep.subr.bf16.mxu0 %v3863_v19  ;;  %v3906_v19 = vld [vmem:[%s5340_s10] ss:$8 sps:$4 sm:$0xff]  }
 0x5e4   :  { %2133 = vmatpush1.bf16.msra.mxu1 %v3858_v20  ;;  %v3908_v20 = vld [vmem:[%s5340_s10 + $0x4] ss:$8 sps:$4 sm:$0xff]  }
 0x5e5   :  { %2256 = vmatpush1.bf16.msra.mxu0 %v3861_v21  ;;  %2134 = vmatprep.subr.bf16.mxu1 %v3866_v22  ;;  %v3911_v21 = vld [vmem:[%s5340_s10 + $0x14] ss:$8 sps:$4 sm:$0xff]   ;;  %v3909_v22 = vld [vmem:[%s5340_s10 + $0x10] ss:$8 sps:$4 sm:$0xff]  }
 0x5e6   :  { %2257 = vmatprep.subr.bf16.mxu0 %v3869_v23  ;;  %v3914_v23 = vld [vmem:[%s5340_s10 + $0x24] ss:$8 sps:$4 sm:$0xff]  }
 0x5e8   :  { %2135 = vmatpush1.bf16.msra.mxu1 %v3864_v24  ;;  %v3912_v24 = vld [vmem:[%s5340_s10 + $0x20] ss:$8 sps:$4 sm:$0xff]  }
 0x5e9   :  { %2258 = vmatpush1.bf16.msra.mxu0 %v3867_v25  ;;  %2136 = vmatprep.subr.bf16.mxu1 %v3872_v26  ;;  %v3917_v25 = vld [vmem:[%s5340_s10 + $0x34] ss:$8 sps:$4 sm:$0xff]   ;;  %v3915_v26 = vld [vmem:[%s5340_s10 + $0x30] ss:$8 sps:$4 sm:$0xff]  }
 0x5ea   :  { %2259 = vmatprep.subr.bf16.mxu0 %v3875_v27  ;;  %v3920_v27 = vld [vmem:[%s5340_s10 + $0x44] ss:$8 sps:$4 sm:$0xff]  }
 0x5ec   :  { %2137 = vmatpush1.bf16.msra.mxu1 %v3870_v28  ;;  %v3918_v28 = vld [vmem:[%s5340_s10 + $0x40] ss:$8 sps:$4 sm:$0xff]  }
 0x5ed   :  { %2260 = vmatpush1.bf16.msra.mxu0 %v3873_v2  ;;  %2138 = vmatprep.subr.bf16.mxu1 %v3878_v30  ;;  %v3923_v2 = vld [vmem:[%s5340_s10 + $0x54] ss:$8 sps:$4 sm:$0xff]   ;;  %v3921_v30 = vld [vmem:[%s5340_s10 + $0x50] ss:$8 sps:$4 sm:$0xff]  }
 0x5ee   :  { %2261 = vmatprep.subr.bf16.mxu0 %v3881_v31  ;;  %v3926_v31 = vld [vmem:[%s5340_s10 + $0x64] ss:$8 sps:$4 sm:$0xff]  }
 0x5f0   :  { %2139 = vmatpush1.bf16.msra.mxu1 %v3876_v32  ;;  %v3924_v32 = vld [vmem:[%s5340_s10 + $0x60] ss:$8 sps:$4 sm:$0xff]  }
 0x5f1   :  { %2262 = vmatpush1.bf16.msra.mxu0 %v3879_v33  ;;  %2140 = vmatprep.subr.bf16.mxu1 %v3884_v34  ;;  %v3929_v33 = vld [vmem:[%s5340_s10 + $0x74] ss:$8 sps:$4 sm:$0xff]   ;;  %v3927_v34 = vld [vmem:[%s5340_s10 + $0x70] ss:$8 sps:$4 sm:$0xff]  }
 0x5f2   :  { %2263 = vmatprep.subr.bf16.mxu0 %v3887_v35  ;;  %v3932_v35 = vld [vmem:[%s5340_s10 + $0x84] ss:$8 sps:$4 sm:$0xff]  }
 0x5f4   :  { %2141 = vmatpush1.bf16.msra.mxu1 %v3882_v36  ;;  %v3930_v36 = vld [vmem:[%s5340_s10 + $0x80] ss:$8 sps:$4 sm:$0xff]  }
 0x5f5   :  { %2264 = vmatpush1.bf16.msra.mxu0 %v3885_v37  ;;  %2142 = vmatprep.subr.bf16.mxu1 %v3890_v38  ;;  %v3935_v37 = vld [vmem:[%s5340_s10 + $0x94] ss:$8 sps:$4 sm:$0xff]   ;;  %v3933_v38 = vld [vmem:[%s5340_s10 + $0x90] ss:$8 sps:$4 sm:$0xff]  }
 0x5f6   :  { %2265 = vmatprep.subr.bf16.mxu0 %v3893_v39  ;;  %v3938_v39 = vld [vmem:[%s5340_s10 + $0xa4] ss:$8 sps:$4 sm:$0xff]  }
 0x5f8   :  { %2143 = vmatpush1.bf16.msra.mxu1 %v3888_v40  ;;  %v3936_v40 = vld [vmem:[%s5340_s10 + $0xa0] ss:$8 sps:$4 sm:$0xff]  }
 0x5f9   :  { %2266 = vmatpush1.bf16.msra.mxu0 %v3891_v42  ;;  %2144 = vmatprep.subr.bf16.mxu1 %v3896_v43 }
 0x5fa   :  { %2267 = vmatprep.subr.bf16.mxu0 %v3899_v44 }
 0x5fc   :  { %2145 = vmatpush1.bf16.msra.mxu1 %v3894_v45 }
 0x5fd   :  { %2268 = vmatpush1.bf16.msra.mxu0 %v3897_v46  ;;  %2146 = vmatprep.subr.bf16.mxu1 %v3902_v51 }
 0x5fe   :  { %2269 = vmatprep.subr.bf16.mxu0 %v3905_v52 }
 0x600   :  { %2147 = vmatpush1.bf16.msra.mxu1 %v3900_v53 }
 0x601   :  { %2270 = vmatpush1.bf16.msra.mxu0 %v3903_v54  ;;  %2772 = vmatprep.subr.bf16.mxu1 %v3908_v20 }
 0x603   :  { %2149 = vmatmul.mubr.bf16.vlgmr.msra.gmra.mrb[8].mxu1 %v858_v55 }
 0x604   :  { %2272 = vmatmul.mubr.bf16.vlgmr.msra.gmra.mrb[16].mxu0 %v858_v55  ;;  %2773 = vmatpush1.bf16.msra.mxu1 %v3906_v19 }
 0x605   :  { %2774 = vmatprep.subr.bf16.mxu1 %v3911_v21 }
 0x608   :  { %2775 = vmatpush1.bf16.msra.mxu1 %v3909_v22 }
 0x609   :  { %2776 = vmatprep.subr.bf16.mxu1 %v3914_v23 }
 0x60c   :  { %2777 = vmatpush1.bf16.msra.mxu1 %v3912_v24 }
 0x60d   :  { %2778 = vmatprep.subr.bf16.mxu1 %v3917_v25 }
 0x610   :  { %2779 = vmatpush1.bf16.msra.mxu1 %v3915_v26 }
 0x611   :  { %2780 = vmatprep.subr.bf16.mxu1 %v3920_v27 }
 0x614   :  { %2781 = vmatpush1.bf16.msra.mxu1 %v3918_v28 }
 0x615   :  { %2782 = vmatprep.subr.bf16.mxu1 %v3923_v2 }
 0x618   :  { %2783 = vmatpush1.bf16.msra.mxu1 %v3921_v30 }
 0x619   :  { %2784 = vmatprep.subr.bf16.mxu1 %v3926_v31 }
 0x61c   :  { %2785 = vmatpush1.bf16.msra.mxu1 %v3924_v32 }
 0x61d   :  { %2786 = vmatprep.subr.bf16.mxu1 %v3929_v33 }
 0x620   :  { %2787 = vmatpush1.bf16.msra.mxu1 %v3927_v34 }
 0x621   :  { %2788 = vmatprep.subr.bf16.mxu1 %v3932_v35 }
 0x624   :  { %2789 = vmatpush1.bf16.msra.mxu1 %v3930_v36 }
 0x625   :  { %2790 = vmatprep.subr.bf16.mxu1 %v3935_v37 }
 0x628   :  { %2791 = vmatpush1.bf16.msra.mxu1 %v3933_v38  ;;  %v3957_v38 = vld [vmem:[%s5340_s10 + $0x110] ss:$8 sps:$4 sm:$0xff]  }
 0x629   :  { %2792 = vmatprep.subr.bf16.mxu1 %v3938_v39  ;;  %v3962_v39 = vld [vmem:[%s5340_s10 + $0x124] ss:$8 sps:$4 sm:$0xff]  }
 0x62c   :  { %2793 = vmatpush1.bf16.msra.mxu1 %v3936_v40  ;;  %v3960_v40 = vld [vmem:[%s5340_s10 + $0x120] ss:$8 sps:$4 sm:$0xff]  }
 0x6d6   :  { %v2150_v60 = vpop.f32.mrb[8].mxu1 }
 0x6d7   :  { %v5006_v61 = vadd.f32 %v2150_v60, %v1057_v57  ;;  %v2273_v62 = vpop.f32.mrb[16].mxu0  ;;  %v2152_v63 = vpop.f32.mrb[9].mxu1 }
 0x6d8   :  { %v5008_v0 = vadd.f32 %v2273_v62, %v1065_v58  ;;  %v5010_v1 = vadd.f32 %v2152_v63, %v1061_v59  ;;  %v2275_v41 = vpop.f32.mrb[17].mxu0  ;;  %v2154_v3 = vpop.f32.mrb[10].mxu1  ;;  %v3941_v62 = vld [vmem:[%s5340_s10 + $0xb4] ss:$8 sps:$4 sm:$0xff]   ;;  %v3939_v63 = vld [vmem:[%s5340_s10 + $0xb0] ss:$8 sps:$4 sm:$0xff]  }
 0x6d9   :  { %v2280_v4 = vmax.f32 %v5006_v61, 0.0  ;;  %v5013_v5 = vadd.f32 %v2275_v41, %v1069_v47  ;;  %v2277_v6 = vpop.f32.mrb[18].mxu0  ;;  %v2155_v7 = vpop.f32.mrb[11].mxu1  ;;  %2794 = vmatprep.subr.bf16.mxu1 %v3941_v62  ;;  %v3947_v41 = vld [vmem:[%s5340_s10 + $0xd4] ss:$8 sps:$4 sm:$0xff]  }
 0x6da   :  { %v2282_v8 = vmax.f32 %v5008_v0, 0.0  ;;  %v2281_v9 = vmax.f32 %v5010_v1, 0.0  ;;  %v2278_v10 = vpop.f32.mrb[19].mxu0  ;;  %v3944_v0 = vld [vmem:[%s5340_s10 + $0xc4] ss:$8 sps:$4 sm:$0xff]   ;;  %2795 = vmatpush1.bf16.msra.mxu1 %v3939_v63 }
 0x6db   :  { %v2287_v11 = vsel %vm2286_vm4, %v2280_v4, 0.0  ;;  %v2283_v13 = vmax.f32 %v5013_v5, 0.0  ;;  %v3942_v1 = vld [vmem:[%s5340_s10 + $0xc0] ss:$8 sps:$4 sm:$0xff]   ;;  %2796 = vmatprep.subr.bf16.mxu1 %v3944_v0  ;;  %v3945_v3 = vld [vmem:[%s5340_s10 + $0xd0] ss:$8 sps:$4 sm:$0xff]  }
 0x6dc   :  { %v2288_v12 = vsel %vm2286_vm4, %v2281_v9, 0.0  ;;  %v2290_v15 = vsel %vm2286_vm4, %v2282_v8, 0.0  ;;  %v3948_v5 = vld [vmem:[%s5340_s10 + $0xe0] ss:$8 sps:$4 sm:$0xff]   ;;  %v3953_v6 = vld [vmem:[%s5340_s10 + $0xf4] ss:$8 sps:$4 sm:$0xff]  }
 0x6dd   :  { %v2289_v14 = vadd.f32 %v2288_v12, %v2287_v11  ;;  %v2292_v17 = vsel %vm2286_vm4, %v2283_v13, 0.0  ;;  %v3951_v7 = vld [vmem:[%s5340_s10 + $0xf0] ss:$8 sps:$4 sm:$0xff]   ;;  %v2284_v12 = vld [vmem:[%s5338_s8] sm:$0xf] }
 0x6de   :  { %2797 = vmatpush1.bf16.msra.mxu1 %v3942_v1  ;;  %v3987_v62 = vld [vmem:[%s5340_s10 + $0x1b0] ss:$8 sps:$4 sm:$0xff]   ;;  %v3992_v63 = vld [vmem:[%s5340_s10 + $0x1c4] ss:$8 sps:$4 sm:$0xff]   ;;  %v3990_v0 = vld [vmem:[%s5340_s10 + $0x1c0] ss:$8 sps:$4 sm:$0xff]  }
 0x6df   :  { %v2291_v16 = vadd.f32 %v2290_v15, %v2289_v14  ;;  %2798 = vmatprep.subr.bf16.mxu1 %v3947_v41  ;;  %v2334_v14 = vrot.slane %v2284_v12, %v4997_v29  ;;  %v2330_v15 = vrot.slane %v2284_v12, %v4386_v50  ;;  %v3995_v1 = vld [vmem:[%s5340_s10 + $0x1d4] ss:$8 sps:$4 sm:$0xff]   ;;  %v3993_v41 = vld [vmem:[%s5340_s10 + $0x1d0] ss:$8 sps:$4 sm:$0xff]  }
 0x6e1   :  { %v2293_v18 = vadd.f32 %v2292_v17, %v2291_v16  ;;  %v2326_v16 = vrot.slane %v2284_v12, %v4383_v49  ;;  %v2338_v17 = vrot.slane %v2284_v12, %v5000_v48 }
 0x6e2   :  { %2799 = vmatpush1.bf16.msra.mxu1 %v3945_v3  ;;  %v3998_v3 = vld [vmem:[%s5340_s10 + $0x1e4] ss:$8 sps:$4 sm:$0xff]  }
 0x6e3   :  { %2294 = vadd.xlane.f32.xlu0 %v2293_v18 }
 0x770   :  { %v2295_v42 = vpop.xlane.xlu0 %2294 }
 0x771   :  { %v2297_v43 = vmul.f32 0.001953125, %v2295_v42  ;;  %v3965_v42 = vld [vmem:[%s5340_s10 + $0x134] ss:$8 sps:$4 sm:$0xff]  }
 0x773   :  { %v2298_v44 = vsub.f32 %v2280_v4, %v2297_v43  ;;  %v2299_v45 = vsub.f32 %v2281_v9, %v2297_v43  ;;  %v2300_v46 = vsub.f32 %v2282_v8, %v2297_v43  ;;  %v2301_v51 = vsub.f32 %v2283_v13, %v2297_v43  ;;  %v3950_v4 = vld [vmem:[%s5340_s10 + $0xe4] ss:$8 sps:$4 sm:$0xff]   ;;  %v2285_v13 = vld [vmem:[%s5339_s9] sm:$0xf]  ;;  %v3963_v43 = vld [vmem:[%s5340_s10 + $0x130] ss:$8 sps:$4 sm:$0xff]  }
 0x774   :  { %2800 = vmatprep.subr.bf16.mxu1 %v3950_v4  ;;  %v3956_v8 = vld [vmem:[%s5340_s10 + $0x104] ss:$8 sps:$4 sm:$0xff]   ;;  %v2355_v19 = vrot.slane %v2285_v13, %v4386_v50  ;;  %v2351_v20 = vrot.slane %v2285_v13, %v4383_v49  ;;  %v2363_v21 = vrot.slane %v2285_v13, %v5000_v48  ;;  %v2359_v22 = vrot.slane %v2285_v13, %v4997_v29  ;;  %v3954_v48 = vld [vmem:[%s5340_s10 + $0x100] ss:$8 sps:$4 sm:$0xff]   ;;  %v3959_v29 = vld [vmem:[%s5340_s10 + $0x114] ss:$8 sps:$4 sm:$0xff]  }
 0x775   :  { %v2302_v52 = vmul.f32 %v2298_v44, %v2298_v44  ;;  %v2303_v53 = vmul.f32 %v2299_v45, %v2299_v45  ;;  %v2304_v54 = vmul.f32 %v2300_v46, %v2300_v46  ;;  %v2305_v55 = vmul.f32 %v2301_v51, %v2301_v51  ;;  %2801 = vmatpush1.bf16.msra.mxu1 %v3948_v5  ;;  %v3996_v4 = vld [vmem:[%s5340_s10 + $0x1e0] ss:$8 sps:$4 sm:$0xff]   ;;  %v4001_v5 = vld [vmem:[%s5340_s10 + $0x1f4] ss:$8 sps:$4 sm:$0xff]  }
 0x776   :  { %2802 = vmatprep.subr.bf16.mxu1 %v3953_v6  ;;  %v3999_v6 = vld [vmem:[%s5340_s10 + $0x1f0] ss:$8 sps:$4 sm:$0xff]  }
 0x777   :  { %v2306_v56 = vsel %vm2286_vm4, %v2302_v52, 0.0  ;;  %v2307_v57 = vsel %vm2286_vm4, %v2303_v53, 0.0  ;;  %v2309_v59 = vsel %vm2286_vm4, %v2304_v54, 0.0  ;;  %v2311_v60 = vsel %vm2286_vm4, %v2305_v55, 0.0  ;;  %v3974_v52 = vld [vmem:[%s5340_s10 + $0x164] ss:$8 sps:$4 sm:$0xff]  }
 0x778   :  { %v2308_v58 = vadd.f32 %v2307_v57, %v2306_v56  ;;  %v3972_v53 = vld [vmem:[%s5340_s10 + $0x160] ss:$8 sps:$4 sm:$0xff]   ;;  %v3977_v54 = vld [vmem:[%s5340_s10 + $0x174] ss:$8 sps:$4 sm:$0xff]   ;;  %v3975_v55 = vld [vmem:[%s5340_s10 + $0x170] ss:$8 sps:$4 sm:$0xff]  }
 0x779   :  { %2803 = vmatpush1.bf16.msra.mxu1 %v3951_v7  ;;  %v3980_v56 = vld [vmem:[%s5340_s10 + $0x184] ss:$8 sps:$4 sm:$0xff]   ;;  %v3978_v57 = vld [vmem:[%s5340_s10 + $0x180] ss:$8 sps:$4 sm:$0xff]  }
 0x77a   :  { %v2310_v47 = vadd.f32 %v2309_v59, %v2308_v58  ;;  %2813 = vmatprep.subr.bf16.mxu1 %v3956_v8  ;;  %v3983_v58 = vld [vmem:[%s5340_s10 + $0x194] ss:$8 sps:$4 sm:$0xff]   ;;  %v3981_v59 = vld [vmem:[%s5340_s10 + $0x190] ss:$8 sps:$4 sm:$0xff]   ;;  %v2440_v8 = vld [vmem:[%s5341_s11] sm:$0x3] }
 0x77c   :  { %v2312_v61 = vadd.f32 %v2311_v60, %v2310_v47  ;;  %v3986_v47 = vld [vmem:[%s5340_s10 + $0x1a4] ss:$8 sps:$4 sm:$0xff]   ;;  %v3984_v60 = vld [vmem:[%s5340_s10 + $0x1a0] ss:$8 sps:$4 sm:$0xff]  }
 0x77e   :  { %2313 = vadd.xlane.f32.xlu1 %v2312_v61  ;;  %v3989_v61 = vld [vmem:[%s5340_s10 + $0x1b4] ss:$8 sps:$4 sm:$0xff]  }
 0x80b   :  { %v2314_v9 = vpop.xlane.xlu1 %2313 }
 0x80c   :  { %v2315_v10 = vmul.f32 0.001953125, %v2314_v9  ;;  %v2445_v9 = vrot.slane %v2440_v8, %v4383_v49 }
 0x80e   :  { %v2316_v11 = vadd.f32 1e-05, %v2315_v10  ;;  %v2449_v10 = vrot.slane %v2440_v8, %v4386_v50 }
 0x810   :  { %4028 = vrsqrt.f32 %v2316_v11 }
 0x81a   :  { %v4029_v18 = vpop.eup %4028 }
 0x81b   :  { %v2319_v23 = vmul.f32 %v4029_v18, %v2299_v45  ;;  %v2318_v24 = vmul.f32 %v4029_v18, %v2298_v44  ;;  %v2321_v25 = vmul.f32 %v4029_v18, %v2301_v51  ;;  %v2320_v26 = vmul.f32 %v4029_v18, %v2300_v46  ;;  %v3968_v44 = vld [vmem:[%s5340_s10 + $0x144] ss:$8 sps:$4 sm:$0xff]   ;;  %v3966_v45 = vld [vmem:[%s5340_s10 + $0x140] ss:$8 sps:$4 sm:$0xff]   ;;  %v3971_v46 = vld [vmem:[%s5340_s10 + $0x154] ss:$8 sps:$4 sm:$0xff]  }
 0x81c   :  { %v3969_v51 = vld [vmem:[%s5340_s10 + $0x150] ss:$8 sps:$4 sm:$0xff]  }
 0x81d   :  { %v2344_v27 = vmul.f32 %v2330_v15, %v2319_v23  ;;  %v2343_v28 = vmul.f32 %v2326_v16, %v2318_v24  ;;  %v2346_v2 = vmul.f32 %v2338_v17, %v2321_v25  ;;  %v2345_v30 = vmul.f32 %v2334_v14, %v2320_v26  ;;  %v4003_v23 = vld [vmem:[%s5344_s14] sm:$0xff]   ;;  %v4004_v24 = vld [vmem:[%s5344_s14 + $0x48] sm:$0xff]  }
 0x81e   :  { %v4005_v25 = vld [vmem:[%s5344_s14 + $0x8] sm:$0xff]  }
 0x81f   :  { %v2369_v31 = vadd.f32 %v2355_v19, %v2344_v27  ;;  %v2368_v32 = vadd.f32 %v2351_v20, %v2343_v28  ;;  %v2371_v33 = vadd.f32 %v2363_v21, %v2346_v2  ;;  %v5139_v34 = vadd.f32 %v2359_v22, %v2345_v30  ;;  %v4002_v22 = vld [vmem:[%s5344_s14 + $0x40] sm:$0xff]  }
 0x820   :  { %3517 = vmatprep.subr.bf16.mxu0 %v4002_v22 }
 0x821   :  { %v2373_v35 = vpack.c.bf16 %v2369_v31, %v2369_v31  ;;  %v2372_v36 = vpack.c.bf16 %v2368_v32, %v2368_v32  ;;  %v2375_v37 = vpack.c.bf16 %v2371_v33, %v2371_v33  ;;  %v2374_v7 = vpack.c.bf16 %v5139_v34, %v5139_v34  ;;  %3518 = vmatpush3.bf16.msra.mxu0 %v4003_v23 }
 0x822   :  { %3519 = vmatprep.subr.bf16.mxu0 %v4004_v24 }
 0x823   :  { %2804 = vmatprep.mubr.bf16.mxu1 %v2373_v35  ;;  %v4006_v35 = vld [vmem:[%s5344_s14 + $0x50] sm:$0xff]  }
 0x824   :  { %2805 = vmatmul.mubr.bf16.vlgmr.msra.gmra.mrb[12].mxu1 %v2372_v36  ;;  %v4008_v36 = vld [vmem:[%s5344_s14 + $0x58] sm:$0xff]  }
 0x825   :  { %2814 = vmatpush1.bf16.msra.mxu1 %v3954_v48  ;;  %2845 = vmatprep.mubr.bf16.mxu1 %v2375_v37  ;;  %v4007_v48 = vld [vmem:[%s5344_s14 + $0x10] sm:$0xff]   ;;  %v4010_v37 = vld [vmem:[%s5344_s14 + $0x60] sm:$0xff]  }
 0x826   :  { %2815 = vmatprep.subr.bf16.mxu1 %v3959_v29  ;;  %3520 = vmatpush3.bf16.msra.mxu0 %v4005_v25  ;;  %v4009_v29 = vld [vmem:[%s5344_s14 + $0x18] sm:$0xff]  }
 0x827   :  { %3521 = vmatprep.subr.bf16.mxu0 %v4006_v35 }
 0x829   :  { %2816 = vmatpush1.bf16.msra.mxu1 %v3957_v38  ;;  %v4011_v38 = vld [vmem:[%s5344_s14 + $0x20] sm:$0xff]  }
 0x82a   :  { %2817 = vmatprep.subr.bf16.mxu1 %v3962_v39  ;;  %3522 = vmatpush3.bf16.msra.mxu0 %v4007_v48  ;;  %v4012_v39 = vld [vmem:[%s5344_s14 + $0x68] sm:$0xff]  }
 0x82b   :  { %3523 = vmatprep.subr.bf16.mxu0 %v4008_v36 }
 0x82d   :  { %2818 = vmatpush1.bf16.msra.mxu1 %v3960_v40  ;;  %v4013_v40 = vld [vmem:[%s5344_s14 + $0x28] sm:$0xff]  }
 0x82e   :  { %2819 = vmatprep.subr.bf16.mxu1 %v3965_v42  ;;  %3524 = vmatpush3.bf16.msra.mxu0 %v4009_v29  ;;  %v4014_v42 = vld [vmem:[%s5344_s14 + $0x70] sm:$0xff]  }
 0x82f   :  { %3525 = vmatprep.subr.bf16.mxu0 %v4010_v37 }
 0x831   :  { %2820 = vmatpush1.bf16.msra.mxu1 %v3963_v43  ;;  %v4015_v43 = vld [vmem:[%s5344_s14 + $0x30] sm:$0xff]  }
 0x832   :  { %2821 = vmatprep.subr.bf16.mxu1 %v3968_v44  ;;  %3526 = vmatpush3.bf16.msra.mxu0 %v4011_v38  ;;  %v4016_v44 = vld [vmem:[%s5344_s14 + $0x78] sm:$0xff]  }
 0x833   :  { %3527 = vmatprep.subr.bf16.mxu0 %v4012_v39 }
 0x835   :  { %2822 = vmatpush1.bf16.msra.mxu1 %v3966_v45  ;;  %v4017_v45 = vld [vmem:[%s5344_s14 + $0x38] sm:$0xff]  }
 0x836   :  { %2823 = vmatprep.subr.bf16.mxu1 %v3971_v46  ;;  %3528 = vmatpush3.bf16.msra.mxu0 %v4013_v40 }
 0x837   :  { %3529 = vmatprep.subr.bf16.mxu0 %v4014_v42 }
 0x839   :  { %2824 = vmatpush1.bf16.msra.mxu1 %v3969_v51 }
 0x83a   :  { %2825 = vmatprep.subr.bf16.mxu1 %v3974_v52  ;;  %3530 = vmatpush3.bf16.msra.mxu0 %v4015_v43 }
 0x83b   :  { %3531 = vmatprep.subr.bf16.mxu0 %v4016_v44 }
 0x83d   :  { %2826 = vmatpush1.bf16.msra.mxu1 %v3972_v53  ;;  %v2856_v53 = vld [vmem:[%s5342_s12] sm:$0x3]  ;;  %s4081_s12 = smov [#allocation5]  }
 0x83e   :  { %2827 = vmatprep.subr.bf16.mxu1 %v3977_v54  ;;  %3532 = vmatpush3.bf16.msra.mxu0 %v4017_v45  ;;  %v2857_v54 = vld [vmem:[%s5343_s13] sm:$0x3]  ;;  %s3111_s13 = sshll.u32 %s4081_s12, 4  ;;  %s3112_s13 = int_to_ptr.vmem [resolvable:$true] %s3111_s13 }
 0x83f   :  { %s4032_s14 = scalar_lea.vmem %s3112_s13, 64  ;;  %p4037_p1 = scmp.lt.s32.totalorder %s3112_s13, %s3112_s13 }
 0x840   :  { %p4033_p0 = scmp.ne.s32.totalorder %s3112_s13, %s4032_s14  ;;  %p4038_p2 = scmp.lt.s32.totalorder %s4032_s14, %s4032_s14 }
 0x841   :  { %2828 = vmatpush1.bf16.msra.mxu1 %v3975_v55  ;;  %v2883_v55 = vrot.slane %v2856_v53, %v4383_v49 }
 0x842   :  { %2829 = vmatprep.subr.bf16.mxu1 %v3980_v56  ;;  %v2887_v56 = vrot.slane %v2856_v53, %v4386_v50  ;;  %p4039_p3 = por %p4038_p2, %p4037_p1 }
 0x844   :  { %p4040_p4 = pnand %p4039_p3, %p4033_p0 }
 0x845   :  { %2830 = vmatpush1.bf16.msra.mxu1 %v3978_v57 }
 0x846   :  { %2831 = vmatprep.subr.bf16.mxu1 %v3983_v58 }
 0x849   :  { %2832 = vmatpush1.bf16.msra.mxu1 %v3981_v59 }
 0x84a   :  { %2833 = vmatprep.subr.bf16.mxu1 %v3986_v47  ;;  %v2896_v47 = vrot.slane %v2857_v54, %v4383_v49 }
 0x84d   :  { %2834 = vmatpush1.bf16.msra.mxu1 %v3984_v60  ;;  %v2900_v60 = vrot.slane %v2857_v54, %v4386_v50 }
 0x84e   :  { %2835 = vmatprep.subr.bf16.mxu1 %v3989_v61 }
 0x851   :  { %2836 = vmatpush1.bf16.msra.mxu1 %v3987_v62 }
 0x852   :  { %2837 = vmatprep.subr.bf16.mxu1 %v3992_v63 }
 0x855   :  { %2838 = vmatpush1.bf16.msra.mxu1 %v3990_v0 }
 0x856   :  { %2839 = vmatprep.subr.bf16.mxu1 %v3995_v1 }
 0x859   :  { %2840 = vmatpush1.bf16.msra.mxu1 %v3993_v41 }
 0x85a   :  { %2841 = vmatprep.subr.bf16.mxu1 %v3998_v3 }
 0x85d   :  { %2842 = vmatpush1.bf16.msra.mxu1 %v3996_v4 }
 0x85e   :  { %2843 = vmatprep.subr.bf16.mxu1 %v4001_v5 }
 0x861   :  { %2844 = vmatpush1.bf16.msra.mxu1 %v3999_v6 }
 0x864   :  { %2846 = vmatmul.mubr.bf16.vlgmr.msra.gmra.mrb[12].mxu1 %v2374_v7 }
 0x937   :  { %v2847_v11 = vpop.f32.mrb[12].mxu1 }
 0x938   :  { %v3543_v12 = vadd.f32 %v2847_v11, %v2445_v9  ;;  %v2849_v13 = vpop.f32.mrb[13].mxu1 }
 0x939   :  { %v3544_v14 = vadd.f32 %v2849_v13, %v2449_v10  ;;  %v2851_v15 = vpop.f32.mrb[14].mxu1 }
 0x93a   :  { %v2854_v16 = vmax.f32 %v3543_v12, 0.0  ;;  %v2852_v17 = vpop.f32.mrb[15].mxu1 }
 0x93b   :  { %v2855_v18 = vmax.f32 %v3544_v14, 0.0 }
 0x93c   :  { %v2858_v19 = vsel %vm2286_vm4, %v2854_v16, 0.0 }
 0x93d   :  { %v2859_v20 = vsel %vm2286_vm4, %v2855_v18, 0.0 }
 0x93e   :  { %v2860_v21 = vadd.f32 %v2859_v20, %v2858_v19 }
 0x940   :  { %2861 = vadd.xlane.f32.xlu0 %v2860_v21 }
 0x9cd   :  { %v2862_v26 = vpop.xlane.xlu0 %2861 }
 0x9ce   :  { %v2864_v27 = vmul.f32 0.00390625, %v2862_v26 }
 0x9d0   :  { %v2865_v28 = vsub.f32 %v2854_v16, %v2864_v27  ;;  %v2866_v2 = vsub.f32 %v2855_v18, %v2864_v27 }
 0x9d2   :  { %v2867_v30 = vmul.f32 %v2865_v28, %v2865_v28  ;;  %v2868_v31 = vmul.f32 %v2866_v2, %v2866_v2 }
 0x9d4   :  { %v2869_v32 = vsel %vm2286_vm4, %v2867_v30, 0.0  ;;  %v2870_v33 = vsel %vm2286_vm4, %v2868_v31, 0.0 }
 0x9d5   :  { %v2871_v34 = vadd.f32 %v2870_v33, %v2869_v32 }
 0x9d7   :  { %2872 = vadd.xlane.f32.xlu0 %v2871_v34 }
 0xa64   :  { %v2873_v46 = vpop.xlane.xlu0 %2872 }
 0xa65   :  { %v2874_v51 = vmul.f32 0.00390625, %v2873_v46 }
 0xa67   :  { %v2875_v52 = vadd.f32 1e-05, %v2874_v51 }
 0xa69   :  { %4030 = vrsqrt.f32 %v2875_v52 }
 0xa73   :  { %v4031_v57 = vpop.eup %4030 }
 0xa74   :  { %v2877_v58 = vmul.f32 %v4031_v57, %v2865_v28  ;;  %v2878_v59 = vmul.f32 %v4031_v57, %v2866_v2 }
 0xa76   :  { %v2891_v61 = vmul.f32 %v2887_v56, %v2878_v59  ;;  %v2890_v62 = vmul.f32 %v2883_v55, %v2877_v58 }
 0xa78   :  { %v2904_v63 = vadd.f32 %v2900_v60, %v2891_v61  ;;  %v2903_v0 = vadd.f32 %v2896_v47, %v2890_v62 }
 0xa7a   :  { %v2906_v1 = vpack.c.bf16 %v2904_v63, %v2904_v63  ;;  %v2905_v41 = vpack.c.bf16 %v2903_v0, %v2903_v0  ;;  %v3084_v3 = vcombine.low %v2903_v0, %v2904_v63 }
 0xa7c   :  { %3074 = vmatprep.mubr.bf16.mxu0 %v2906_v1  ;;  %3450 = vst.sshfl [vmem:[#allocation5] sm:$0x33 pattern:$0x76325410] %v3084_v3 }
 0xa7d   :  { %3075 = vmatmul.mubr.bf16.vlgmr.msra.gmra.mrb[20].mxu0 %v2905_v41 }
 0xa7e   :  { %4043 = shalt.err (!%p4040_p4)
}
 0xa7f   :  { %s4044_s25 = scalar_lea.hbm %s5347_s17, 64 }
 0xa80   :  { %p4045_p5 = scmp.ne.s32.totalorder %s5347_s17, %s4044_s25  ;;  %p4048_p6 = scmp.lt.u32.totalorder %s4044_s25, %s5347_s17 }
 0xa82   :  { %p4050_p7 = pnand %p4048_p6, %p4045_p5 }
 0xa84   :  { %4053 = shalt.err (!%p4050_p7)
}
 0xa85   :  { %3114 = dma.vmem_to_hbm [thread:$0]  %s3112_s13, 64, %s5347_s17, [#allocation6]   ;;  %v3433_v4 = vld [vmem:[%s5345_s15] ss:$0 sm:$0xff] }
 0xa86   :  { %s4082_s19 = smov [#allocation3]  }
 0xa87   :  { %s3101_s6 = sshll.u32 %s4082_s19, 4  ;;  %s3102_s6 = int_to_ptr.vmem [resolvable:$true] %s3101_s6 }
 0xa88   :  { %s4054_s7 = scalar_lea.vmem %s3102_s6, 32  ;;  %p4059_p9 = scmp.lt.s32.totalorder %s3102_s6, %s3102_s6 }
 0xa89   :  { %p4055_p8 = scmp.ne.s32.totalorder %s3102_s6, %s4054_s7  ;;  %p4060_p10 = scmp.lt.s32.totalorder %s4054_s7, %s4054_s7 }
 0xa8b   :  { %p4061_p11 = por %p4060_p10, %p4059_p9 }
 0xa8d   :  { %p4062_p12 = pnand %p4061_p11, %p4055_p8 }
 0xb50   :  { %v3533_v49 = vpop.f32.mrb[20].mxu0 }
 0xb51   :  { %v3534_v50 = vpop.f32.mrb[21].mxu0 }
 0xb52   :  { %v3535_v5 = vadd.f32 %v3534_v50, %v3533_v49  ;;  %v3536_v6 = vpop.f32.mrb[22].mxu0 }
 0xb53   :  { %v3537_v7 = vpop.f32.mrb[23].mxu0 }
 0xb54   :  { %v3077_v8 = vadd.f32 %v3535_v5, %v3433_v4 }
 0xb56   :  { %3094 = vst [vmem:[#allocation3] sm:$0x3] %v3077_v8 }
 0xb57   :  { %4065 = shalt.err (!%p4062_p12)
}
 0xb58   :  { %s4066_s11 = scalar_lea.hbm %s5346_s16, 32 }
 0xb59   :  { %p4067_p13 = scmp.ne.s32.totalorder %s5346_s16, %s4066_s11  ;;  %p4070_p0 = scmp.lt.u32.totalorder %s4066_s11, %s5346_s16 }
 0xb5b   :  { %p4072_p1 = pnand %p4070_p0, %p4067_p13 }
 0xb5d   :  { %4075 = shalt.err (!%p4072_p1)
}
 0xb5e   :  { %3104 = dma.vmem_to_hbm [thread:$0]  %s3102_s6, 32, %s5346_s16, [#allocation4]  }
 0xb5f   :  { %4076 = dma.done.wait [#allocation4], 32  }
 0xb60   :  { %4077 = vsyncadd [#allocation4], 4294967264 }
 0xb61   :  { %4078 = dma.done.wait [#allocation6], 64  }
 0xb62   :  { %4079 = vsyncadd [#allocation6], 4294967232 }
 0xb63   :  { %3121 = vsyncpa [#allocation4], 1 }
 0xb64   :  { %3122 = vsyncpa [#allocation6], 1 }

</bundles_post_ra>
